<compile_context>
chip_gen: v7x
topology: tpu7x:2x2x1
jax: 0.10.0
libtpu: 0.0.40
codegen_flags: <defaults>
</compile_context>

<pallas_src>
import functools

import jax
import jax.numpy as jnp
import numpy as np
from jax.experimental import pallas as pl
from jax.experimental.pallas import tpu as pltpu

STACK_SIZE = 4
LANE = 128
VMEM_LIMIT = 32 * 1024 * 1024  # safe on v5e/v6e (128 MiB) and v7x (64 MiB)


def _round_up(x, m):
    return -(-x // m) * m


# ----------------------------------------------------------------------------
# Pallas kernel 1: Y = relu?(X @ W + b)   (conv-as-matmul layers)
# ----------------------------------------------------------------------------
def _mm_bias_act_kernel(x_ref, w_ref, b_ref, o_ref, *, apply_relu):
    acc = jnp.dot(x_ref[...], w_ref[...], preferred_element_type=jnp.float32)
    acc = acc + b_ref[...]                       # (1, O_pad) broadcasts over TM
    if apply_relu:
        acc = jnp.maximum(acc, 0.0)
    o_ref[...] = acc.astype(o_ref.dtype)


def matmul_bias_act(x, w, b2, *, apply_relu, out_dtype=jnp.bfloat16, tm_max=512):
    """x: [M, K]; w: [K, O_pad] bf16 (O_pad % 128 == 0); b2: [1, O_pad] f32."""
    M, K = x.shape
    O_pad = w.shape[1]
    TM = min(tm_max, _round_up(M, 16))
    M_pad = _round_up(M, TM)
    if M_pad != M:
        x = jnp.pad(x, ((0, M_pad - M), (0, 0)))
    x = x.astype(jnp.bfloat16)

    flops = 2 * M_pad * K * O_pad + 2 * M_pad * O_pad
    bytes_accessed = (M_pad * K * 2 + K * O_pad * 2 + O_pad * 4
                      + M_pad * O_pad * jnp.dtype(out_dtype).itemsize)

    out = pl.pallas_call(
        functools.partial(_mm_bias_act_kernel, apply_relu=apply_relu),
        out_shape=jax.ShapeDtypeStruct((M_pad, O_pad), out_dtype),
        grid=(M_pad // TM,),
        in_specs=[
            pl.BlockSpec((TM, K), lambda i: (i, 0)),        # activations, M-tiled
            pl.BlockSpec((K, O_pad), lambda i: (0, 0)),     # weights, VMEM-resident
            pl.BlockSpec((1, O_pad), lambda i: (0, 0)),     # bias, loaded once
        ],
        out_specs=pl.BlockSpec((TM, O_pad), lambda i: (i, 0)),
        compiler_params=pltpu.CompilerParams(
            dimension_semantics=("parallel",),
            vmem_limit_bytes=VMEM_LIMIT),
        cost_estimate=pl.CostEstimate(
            flops=flops, transcendentals=0, bytes_accessed=bytes_accessed),
    )(x, w, b2)
    return out[:M] if M_pad != M else out


# ----------------------------------------------------------------------------
# Pallas kernel 2: fused FC head  q = relu(X @ W1 + b1) @ W2 + b2
# ----------------------------------------------------------------------------
def _fc_head_kernel(x_ref, w1_ref, b1_ref, w2_ref, b2_ref, o_ref):
    h = jnp.dot(x_ref[...], w1_ref[...], preferred_element_type=jnp.float32)
    h = jnp.maximum(h + b1_ref[...], 0.0).astype(w2_ref.dtype)
    q = jnp.dot(h, w2_ref[...], preferred_element_type=jnp.float32)
    o_ref[...] = (q + b2_ref[...]).astype(o_ref.dtype)


def fc_head(x, w1, b1, w2, b2, *, tm_max=256):
    """x: [N, K1]; w1: [K1, H] bf16; b1: [1, H] f32; w2: [H, A_pad] bf16; b2: [1, A_pad] f32."""
    N, K1 = x.shape
    H = w1.shape[1]
    A_pad = w2.shape[1]
    TM = min(tm_max, _round_up(N, 16))
    N_pad = _round_up(N, TM)
    if N_pad != N:
        x = jnp.pad(x, ((0, N_pad - N), (0, 0)))
    x = x.astype(jnp.bfloat16)

    flops = 2 * N_pad * K1 * H + 2 * N_pad * H * A_pad
    bytes_accessed = (N_pad * K1 * 2 + K1 * H * 2 + H * 4
                      + H * A_pad * 2 + A_pad * 4 + N_pad * A_pad * 4)

    out = pl.pallas_call(
        _fc_head_kernel,
        out_shape=jax.ShapeDtypeStruct((N_pad, A_pad), jnp.float32),
        grid=(N_pad // TM,),
        in_specs=[
            pl.BlockSpec((TM, K1), lambda i: (i, 0)),
            pl.BlockSpec((K1, H), lambda i: (0, 0)),
            pl.BlockSpec((1, H), lambda i: (0, 0)),
            pl.BlockSpec((H, A_pad), lambda i: (0, 0)),
            pl.BlockSpec((1, A_pad), lambda i: (0, 0)),
        ],
        out_specs=pl.BlockSpec((TM, A_pad), lambda i: (i, 0)),
        compiler_params=pltpu.CompilerParams(
            dimension_semantics=("parallel",),
            vmem_limit_bytes=VMEM_LIMIT),
        cost_estimate=pl.CostEstimate(
            flops=flops, transcendentals=0, bytes_accessed=bytes_accessed),
    )(x, w1, b1, w2, b2)
    return out[:N] if N_pad != N else out


# ----------------------------------------------------------------------------
# Conv2d (valid, square kernel/stride) via NHWC im2col glue + Pallas matmul.
# ----------------------------------------------------------------------------
def conv2d_relu(x_nhwc, w_packed, b_packed, *, ksize, stride, c_in):
    """x_nhwc: [N, H, W, C>=c_in]; w_packed: [K*K*c_in, O_pad] bf16;
       b_packed: [1, O_pad] f32  ->  [N, Ho, Wo, O_pad] bf16 (ReLU applied)."""
    N, H, W, _ = x_nhwc.shape
    K, S = ksize, stride
    Ho = (H - K) // S + 1
    Wo = (W - K) // S + 1

    # im2col glue: (ky, kx, c) ordering, channel last => lane-contiguous in C.
    cols = []
    for ky in range(K):
        for kx in range(K):
            cols.append(x_nhwc[:, ky:ky + S * (Ho - 1) + 1:S,
                               kx:kx + S * (Wo - 1) + 1:S, :c_in])  # [N,Ho,Wo,c_in]
    patches = jnp.concatenate(cols, axis=-1).reshape(N * Ho * Wo, K * K * c_in)

    y = matmul_bias_act(patches, w_packed, b_packed, apply_relu=True,
                        out_dtype=jnp.bfloat16)                      # [N*Ho*Wo, O_pad]
    return y.reshape(N, Ho, Wo, -1)


# ----------------------------------------------------------------------------
# Parameters (PyTorch layout) + one-time packing for the Pallas kernels.
# ----------------------------------------------------------------------------
def _conv_out_hw(h, w):
    h = (h - 8) // 4 + 1; w = (w - 8) // 4 + 1
    h = (h - 4) // 2 + 1; w = (w - 4) // 2 + 1
    h = (h - 3) // 1 + 1; w = (w - 3) // 1 + 1
    return h, w


def init_params(key, input_shape, n_actions):
    c, h, w = input_shape
    ho, wo = _conv_out_hw(h, w)
    conv_out_size = 64 * ho * wo
    ks = jax.random.split(key, 10)

    def u(k, shape, fan_in):   # PyTorch-style uniform(-1/sqrt(fan_in), ...)
        bound = 1.0 / np.sqrt(fan_in)
        return jax.random.uniform(k, shape, jnp.float32, -bound, bound)

    return {
        "conv1_w": u(ks[0], (32, c, 8, 8), c * 8 * 8),
        "conv1_b": u(ks[1], (32,), c * 8 * 8),
        "conv2_w": u(ks[2], (64, 32, 4, 4), 32 * 4 * 4),
        "conv2_b": u(ks[3], (64,), 32 * 4 * 4),
        "conv3_w": u(ks[4], (64, 64, 3, 3), 64 * 3 * 3),
        "conv3_b": u(ks[5], (64,), 64 * 3 * 3),
        "fc1_w":   u(ks[6], (512, conv_out_size), conv_out_size),
        "fc1_b":   u(ks[7], (512,), conv_out_size),
        "fc2_w":   u(ks[8], (n_actions, 512), 512),
        "fc2_b":   u(ks[9], (n_actions,), 512),
    }


def prepare_params(params, input_shape):
    """One-time: transpose to (ky,kx,c)->o matmul layout, pad O to 128, cast bf16."""
    _, h, w = input_shape
    h3, w3 = _conv_out_hw(h, w)

    def conv_w(wt):                                # [O, C, K, K] -> [K*K*C, O_pad] bf16
        O, C, K, _ = wt.shape
        O_pad = _round_up(O, LANE)
        w2 = jnp.transpose(wt, (2, 3, 1, 0)).reshape(K * K * C, O)
        return jnp.pad(w2, ((0, 0), (0, O_pad - O))).astype(jnp.bfloat16)

    def bias(bt, O_pad):
        return jnp.pad(bt, (0, O_pad - bt.shape[0])).reshape(1, O_pad).astype(jnp.float32)

    # fc1 weight: torch flatten order is (c,h,w); our NHWC flatten is (h,w,c).
    fc1 = (params["fc1_w"].reshape(512, 64, h3, w3)
           .transpose(0, 2, 3, 1).reshape(512, h3 * w3 * 64).T)       # [conv_out, 512]
    A = params["fc2_w"].shape[0]
    A_pad = _round_up(A, LANE)
    fc2 = jnp.pad(params["fc2_w"].T, ((0, 0), (0, A_pad - A)))        # [512, A_pad]

    return {
        "c1_w": conv_w(params["conv1_w"]), "c1_b": bias(params["conv1_b"], _round_up(32, LANE)),
        "c2_w": conv_w(params["conv2_w"]), "c2_b": bias(params["conv2_b"], _round_up(64, LANE)),
        "c3_w": conv_w(params["conv3_w"]), "c3_b": bias(params["conv3_b"], _round_up(64, LANE)),
        "fc1_w": fc1.astype(jnp.bfloat16),
        "fc1_b": params["fc1_b"].reshape(1, 512).astype(jnp.float32),
        "fc2_w": fc2.astype(jnp.bfloat16),
        "fc2_b": bias(params["fc2_b"], A_pad),
    }


# ----------------------------------------------------------------------------
# Forward pass (semantics identical to the PyTorch DQN module).
# ----------------------------------------------------------------------------
def dqn_forward(prep, x, *, n_actions):
    """x: [N, STACK_SIZE, H, W] f32 (NCHW, like PyTorch) -> Q-values [N, n_actions] f32."""
    x = jnp.transpose(x, (0, 2, 3, 1))                                   # NHWC once
    y = conv2d_relu(x, prep["c1_w"], prep["c1_b"], ksize=8, stride=4, c_in=STACK_SIZE)
    y = conv2d_relu(y, prep["c2_w"], prep["c2_b"], ksize=4, stride=2, c_in=32)
    y = conv2d_relu(y, prep["c3_w"], prep["c3_b"], ksize=3, stride=1, c_in=64)
    n, h3, w3, _ = y.shape
    fc_in = y[..., :64].reshape(n, h3 * w3 * 64)       # (h,w,c) flatten; fc1_w pre-permuted
    q = fc_head(fc_in, prep["fc1_w"], prep["fc1_b"], prep["fc2_w"], prep["fc2_b"])
    return q[:, :n_actions]


# ----------------------------------------------------------------------------
# Pure-JAX f32 reference (for correctness check only).
# ----------------------------------------------------------------------------
def ref_forward(params, x):
    def conv(x, w, b, s):
        y = jax.lax.conv_general_dilated(
            x, w, (s, s), "VALID", dimension_numbers=("NCHW", "OIHW", "NCHW"))
        return y + b.reshape(1, -1, 1, 1)

    y = jax.nn.relu(conv(x, params["conv1_w"], params["conv1_b"], 4))
    y = jax.nn.relu(conv(y, params["conv2_w"], params["conv2_b"], 2))
    y = jax.nn.relu(conv(y, params["conv3_w"], params["conv3_b"], 1))
    y = y.reshape(y.shape[0], -1)
    y = jax.nn.relu(y @ params["fc1_w"].T + params["fc1_b"])
    return y @ params["fc2_w"].T + params["fc2_b"]


if __name__ == "__main__":
    # Small shapes consistent with the module: NCHW, 4 stacked frames, 44x44
    # spatial (conv stack gives 10 -> 4 -> 2, so conv_out_size = 64*2*2 = 256).
    batch, H, W = 2, 44, 44
    n_actions = 6

    key = jax.random.PRNGKey(0)
    pkey, xkey = jax.random.split(key)
    params = init_params(pkey, (STACK_SIZE, H, W), n_actions)
    x = jax.random.uniform(xkey, (batch, STACK_SIZE, H, W), jnp.float32)

    prep = prepare_params(params, (STACK_SIZE, H, W))
    fwd = jax.jit(functools.partial(dqn_forward, n_actions=n_actions))
    q = fwd(prep, x)
    jax.block_until_ready(q)

    # bf16 operands / f32 accumulation vs. f32 reference -> relaxed tolerance.
    q_ref = ref_forward(params, x)
    np.testing.assert_allclose(np.asarray(q), np.asarray(q_ref), rtol=5e-2, atol=5e-3)
    assert q.shape == (batch, n_actions)
    print("KERNEL_OK")
</pallas_src>

<mosaic_0001>
module attributes {stable_mosaic.version = 11 : i64} {
  func.func @_mm_bias_act_kernel(%arg0: i32, %arg1: memref<208x256xbf16, #tpu.memory_space<vmem>>, %arg2: memref<256x128xbf16, #tpu.memory_space<vmem>>, %arg3: memref<1x128xf32, #tpu.memory_space<vmem>>, %arg4: memref<208x128xbf16, #tpu.memory_space<vmem>>) attributes {dimension_semantics = [#tpu.dimension_semantics<parallel>], iteration_bounds = array<i64: 1>, scalar_prefetch = 0 : i64, scratch_operands = 0 : i64, tpu.core_type = #tpu.core_type<tc>, window_params = [{transform_indices = @transform_0, window_bounds = array<i64: 208, 256>}, {pipeline_mode = #tpu.pipeline_mode<synchronous>, transform_indices = @transform_1, window_bounds = array<i64: 256, 128>}, {pipeline_mode = #tpu.pipeline_mode<synchronous>, transform_indices = @transform_2, window_bounds = array<i64: 1, 128>}, {transform_indices = @transform_3, window_bounds = array<i64: 208, 128>}]} {
    %c0 = arith.constant 0 : index
    %c0_0 = arith.constant 0 : index
    %0 = vector.load %arg1[%c0, %c0_0] : memref<208x256xbf16, #tpu.memory_space<vmem>>, vector<208x256xbf16>
    %c0_1 = arith.constant 0 : index
    %c0_2 = arith.constant 0 : index
    %1 = vector.load %arg2[%c0_1, %c0_2] : memref<256x128xbf16, #tpu.memory_space<vmem>>, vector<256x128xbf16>
    %cst = arith.constant dense<0.000000e+00> : vector<208x128xf32>
    %2 = tpu.matmul %0, %1, %cst {dimension_numbers = #tpu.dot_dimension_numbers<[1], [0], [0], [1], [0, 0, 1, 1], [], []>} : vector<208x256xbf16>, vector<256x128xbf16>, vector<208x128xf32> -> vector<208x128xf32>
    %c0_3 = arith.constant 0 : index
    %c0_4 = arith.constant 0 : index
    %3 = vector.load %arg3[%c0_3, %c0_4] : memref<1x128xf32, #tpu.memory_space<vmem>>, vector<1x128xf32>
    %4 = vector.broadcast %3 : vector<1x128xf32> to vector<208x128xf32>
    %5 = arith.addf %2, %4 : vector<208x128xf32>
    %cst_5 = arith.constant 0.000000e+00 : f32
    %6 = vector.broadcast %cst_5 : f32 to vector<208x128xf32>
    %7 = arith.maximumf %5, %6 : vector<208x128xf32>
    %8 = arith.truncf %7 : vector<208x128xf32> to vector<208x128xbf16>
    %c0_6 = arith.constant 0 : index
    %c0_7 = arith.constant 0 : index
    %9 = vector.load %arg4[%c0_6, %c0_7] : memref<208x128xbf16, #tpu.memory_space<vmem>>, vector<208x128xbf16>
    tpu.vector_store %arg4[%c0_6, %c0_7], %8 {strides = array<i32>} : memref<208x128xbf16, #tpu.memory_space<vmem>>, vector<208x128xbf16>,
    return
  }
  func.func @transform_0(%arg0: i32) -> (i32, i32) {
    %c0_i32 = arith.constant 0 : i32
    %c0_i32_0 = arith.constant 0 : i32
    return %arg0, %c0_i32 : i32, i32
  }
  func.func @transform_1(%arg0: i32) -> (i32, i32) {
    %c0_i32 = arith.constant 0 : i32
    %c0_i32_0 = arith.constant 0 : i32
    %c0_i32_1 = arith.constant 0 : i32
    return %c0_i32, %c0_i32_0 : i32, i32
  }
  func.func @transform_2(%arg0: i32) -> (i32, i32) {
    %c0_i32 = arith.constant 0 : i32
    %c0_i32_0 = arith.constant 0 : i32
    %c0_i32_1 = arith.constant 0 : i32
    return %c0_i32, %c0_i32_0 : i32, i32
  }
  func.func @transform_3(%arg0: i32) -> (i32, i32) {
    %c0_i32 = arith.constant 0 : i32
    %c0_i32_0 = arith.constant 0 : i32
    return %arg0, %c0_i32 : i32, i32
  }
}

module attributes {stable_mosaic.version = 11 : i64} {
  func.func @_mm_bias_act_kernel(%arg0: i32, %arg1: memref<32x512xbf16, #tpu.memory_space<vmem>>, %arg2: memref<512x128xbf16, #tpu.memory_space<vmem>>, %arg3: memref<1x128xf32, #tpu.memory_space<vmem>>, %arg4: memref<32x128xbf16, #tpu.memory_space<vmem>>) attributes {dimension_semantics = [#tpu.dimension_semantics<parallel>], iteration_bounds = array<i64: 1>, scalar_prefetch = 0 : i64, scratch_operands = 0 : i64, tpu.core_type = #tpu.core_type<tc>, window_params = [{transform_indices = @transform_0, window_bounds = array<i64: 32, 512>}, {pipeline_mode = #tpu.pipeline_mode<synchronous>, transform_indices = @transform_1, window_bounds = array<i64: 512, 128>}, {pipeline_mode = #tpu.pipeline_mode<synchronous>, transform_indices = @transform_2, window_bounds = array<i64: 1, 128>}, {transform_indices = @transform_3, window_bounds = array<i64: 32, 128>}]} {
    %c0 = arith.constant 0 : index
    %c0_0 = arith.constant 0 : index
    %0 = vector.load %arg1[%c0, %c0_0] : memref<32x512xbf16, #tpu.memory_space<vmem>>, vector<32x512xbf16>
    %c0_1 = arith.constant 0 : index
    %c0_2 = arith.constant 0 : index
    %1 = vector.load %arg2[%c0_1, %c0_2] : memref<512x128xbf16, #tpu.memory_space<vmem>>, vector<512x128xbf16>
    %cst = arith.constant dense<0.000000e+00> : vector<32x128xf32>
    %2 = tpu.matmul %0, %1, %cst {dimension_numbers = #tpu.dot_dimension_numbers<[1], [0], [0], [1], [0, 0, 1, 1], [], []>} : vector<32x512xbf16>, vector<512x128xbf16>, vector<32x128xf32> -> vector<32x128xf32>
    %c0_3 = arith.constant 0 : index
    %c0_4 = arith.constant 0 : index
    %3 = vector.load %arg3[%c0_3, %c0_4] : memref<1x128xf32, #tpu.memory_space<vmem>>, vector<1x128xf32>
    %4 = vector.broadcast %3 : vector<1x128xf32> to vector<32x128xf32>
    %5 = arith.addf %2, %4 : vector<32x128xf32>
    %cst_5 = arith.constant 0.000000e+00 : f32
    %6 = vector.broadcast %cst_5 : f32 to vector<32x128xf32>
    %7 = arith.maximumf %5, %6 : vector<32x128xf32>
    %8 = arith.truncf %7 : vector<32x128xf32> to vector<32x128xbf16>
    %c0_6 = arith.constant 0 : index
    %c0_7 = arith.constant 0 : index
    %9 = vector.load %arg4[%c0_6, %c0_7] : memref<32x128xbf16, #tpu.memory_space<vmem>>, vector<32x128xbf16>
    tpu.vector_store %arg4[%c0_6, %c0_7], %8 {strides = array<i32>} : memref<32x128xbf16, #tpu.memory_space<vmem>>, vector<32x128xbf16>,
    return
  }
  func.func @transform_0(%arg0: i32) -> (i32, i32) {
    %c0_i32 = arith.constant 0 : i32
    %c0_i32_0 = arith.constant 0 : i32
    return %arg0, %c0_i32 : i32, i32
  }
  func.func @transform_1(%arg0: i32) -> (i32, i32) {
    %c0_i32 = arith.constant 0 : i32
    %c0_i32_0 = arith.constant 0 : i32
    %c0_i32_1 = arith.constant 0 : i32
    return %c0_i32, %c0_i32_0 : i32, i32
  }
  func.func @transform_2(%arg0: i32) -> (i32, i32) {
    %c0_i32 = arith.constant 0 : i32
    %c0_i32_0 = arith.constant 0 : i32
    %c0_i32_1 = arith.constant 0 : i32
    return %c0_i32, %c0_i32_0 : i32, i32
  }
  func.func @transform_3(%arg0: i32) -> (i32, i32) {
    %c0_i32 = arith.constant 0 : i32
    %c0_i32_0 = arith.constant 0 : i32
    return %arg0, %c0_i32 : i32, i32
  }
}

module attributes {stable_mosaic.version = 11 : i64} {
  func.func @_mm_bias_act_kernel(%arg0: i32, %arg1: memref<16x576xbf16, #tpu.memory_space<vmem>>, %arg2: memref<576x128xbf16, #tpu.memory_space<vmem>>, %arg3: memref<1x128xf32, #tpu.memory_space<vmem>>, %arg4: memref<16x128xbf16, #tpu.memory_space<vmem>>) attributes {dimension_semantics = [#tpu.dimension_semantics<parallel>], iteration_bounds = array<i64: 1>, scalar_prefetch = 0 : i64, scratch_operands = 0 : i64, tpu.core_type = #tpu.core_type<tc>, window_params = [{transform_indices = @transform_0, window_bounds = array<i64: 16, 576>}, {pipeline_mode = #tpu.pipeline_mode<synchronous>, transform_indices = @transform_1, window_bounds = array<i64: 576, 128>}, {pipeline_mode = #tpu.pipeline_mode<synchronous>, transform_indices = @transform_2, window_bounds = array<i64: 1, 128>}, {transform_indices = @transform_3, window_bounds = array<i64: 16, 128>}]} {
    %c0 = arith.constant 0 : index
    %c0_0 = arith.constant 0 : index
    %0 = vector.load %arg1[%c0, %c0_0] : memref<16x576xbf16, #tpu.memory_space<vmem>>, vector<16x576xbf16>
    %c0_1 = arith.constant 0 : index
    %c0_2 = arith.constant 0 : index
    %1 = vector.load %arg2[%c0_1, %c0_2] : memref<576x128xbf16, #tpu.memory_space<vmem>>, vector<576x128xbf16>
    %cst = arith.constant dense<0.000000e+00> : vector<16x128xf32>
    %2 = tpu.matmul %0, %1, %cst {dimension_numbers = #tpu.dot_dimension_numbers<[1], [0], [0], [1], [0, 0, 1, 1], [], []>} : vector<16x576xbf16>, vector<576x128xbf16>, vector<16x128xf32> -> vector<16x128xf32>
    %c0_3 = arith.constant 0 : index
    %c0_4 = arith.constant 0 : index
    %3 = vector.load %arg3[%c0_3, %c0_4] : memref<1x128xf32, #tpu.memory_space<vmem>>, vector<1x128xf32>
    %4 = vector.broadcast %3 : vector<1x128xf32> to vector<16x128xf32>
    %5 = arith.addf %2, %4 : vector<16x128xf32>
    %cst_5 = arith.constant 0.000000e+00 : f32
    %6 = vector.broadcast %cst_5 : f32 to vector<16x128xf32>
    %7 = arith.maximumf %5, %6 : vector<16x128xf32>
    %8 = arith.truncf %7 : vector<16x128xf32> to vector<16x128xbf16>
    %c0_6 = arith.constant 0 : index
    %c0_7 = arith.constant 0 : index
    %9 = vector.load %arg4[%c0_6, %c0_7] : memref<16x128xbf16, #tpu.memory_space<vmem>>, vector<16x128xbf16>
    tpu.vector_store %arg4[%c0_6, %c0_7], %8 {strides = array<i32>} : memref<16x128xbf16, #tpu.memory_space<vmem>>, vector<16x128xbf16>,
    return
  }
  func.func @transform_0(%arg0: i32) -> (i32, i32) {
    %c0_i32 = arith.constant 0 : i32
    %c0_i32_0 = arith.constant 0 : i32
    return %arg0, %c0_i32 : i32, i32
  }
  func.func @transform_1(%arg0: i32) -> (i32, i32) {
    %c0_i32 = arith.constant 0 : i32
    %c0_i32_0 = arith.constant 0 : i32
    %c0_i32_1 = arith.constant 0 : i32
    return %c0_i32, %c0_i32_0 : i32, i32
  }
  func.func @transform_2(%arg0: i32) -> (i32, i32) {
    %c0_i32 = arith.constant 0 : i32
    %c0_i32_0 = arith.constant 0 : i32
    %c0_i32_1 = arith.constant 0 : i32
    return %c0_i32, %c0_i32_0 : i32, i32
  }
  func.func @transform_3(%arg0: i32) -> (i32, i32) {
    %c0_i32 = arith.constant 0 : i32
    %c0_i32_0 = arith.constant 0 : i32
    return %arg0, %c0_i32 : i32, i32
  }
}

module attributes {stable_mosaic.version = 11 : i64} {
  func.func @_fc_head_kernel(%arg0: i32, %arg1: memref<16x256xbf16, #tpu.memory_space<vmem>>, %arg2: memref<256x512xbf16, #tpu.memory_space<vmem>>, %arg3: memref<1x512xf32, #tpu.memory_space<vmem>>, %arg4: memref<512x128xbf16, #tpu.memory_space<vmem>>, %arg5: memref<1x128xf32, #tpu.memory_space<vmem>>, %arg6: memref<16x128xf32, #tpu.memory_space<vmem>>) attributes {dimension_semantics = [#tpu.dimension_semantics<parallel>], iteration_bounds = array<i64: 1>, scalar_prefetch = 0 : i64, scratch_operands = 0 : i64, tpu.core_type = #tpu.core_type<tc>, window_params = [{transform_indices = @transform_0, window_bounds = array<i64: 16, 256>}, {pipeline_mode = #tpu.pipeline_mode<synchronous>, transform_indices = @transform_1, window_bounds = array<i64: 256, 512>}, {pipeline_mode = #tpu.pipeline_mode<synchronous>, transform_indices = @transform_2, window_bounds = array<i64: 1, 512>}, {pipeline_mode = #tpu.pipeline_mode<synchronous>, transform_indices = @transform_3, window_bounds = array<i64: 512, 128>}, {pipeline_mode = #tpu.pipeline_mode<synchronous>, transform_indices = @transform_4, window_bounds = array<i64: 1, 128>}, {transform_indices = @transform_5, window_bounds = array<i64: 16, 128>}]} {
    %c0 = arith.constant 0 : index
    %c0_0 = arith.constant 0 : index
    %0 = vector.load %arg1[%c0, %c0_0] : memref<16x256xbf16, #tpu.memory_space<vmem>>, vector<16x256xbf16>
    %c0_1 = arith.constant 0 : index
    %c0_2 = arith.constant 0 : index
    %1 = vector.load %arg2[%c0_1, %c0_2] : memref<256x512xbf16, #tpu.memory_space<vmem>>, vector<256x512xbf16>
    %cst = arith.constant dense<0.000000e+00> : vector<16x512xf32>
    %2 = tpu.matmul %0, %1, %cst {dimension_numbers = #tpu.dot_dimension_numbers<[1], [0], [0], [1], [0, 0, 1, 1], [], []>} : vector<16x256xbf16>, vector<256x512xbf16>, vector<16x512xf32> -> vector<16x512xf32>
    %c0_3 = arith.constant 0 : index
    %c0_4 = arith.constant 0 : index
    %3 = vector.load %arg3[%c0_3, %c0_4] : memref<1x512xf32, #tpu.memory_space<vmem>>, vector<1x512xf32>
    %4 = vector.broadcast %3 : vector<1x512xf32> to vector<16x512xf32>
    %5 = arith.addf %2, %4 : vector<16x512xf32>
    %cst_5 = arith.constant 0.000000e+00 : f32
    %6 = vector.broadcast %cst_5 : f32 to vector<16x512xf32>
    %7 = arith.maximumf %5, %6 : vector<16x512xf32>
    %8 = arith.truncf %7 : vector<16x512xf32> to vector<16x512xbf16>
    %c0_6 = arith.constant 0 : index
    %c0_7 = arith.constant 0 : index
    %9 = vector.load %arg4[%c0_6, %c0_7] : memref<512x128xbf16, #tpu.memory_space<vmem>>, vector<512x128xbf16>
    %cst_8 = arith.constant dense<0.000000e+00> : vector<16x128xf32>
    %10 = tpu.matmul %8, %9, %cst_8 {dimension_numbers = #tpu.dot_dimension_numbers<[1], [0], [0], [1], [0, 0, 1, 1], [], []>} : vector<16x512xbf16>, vector<512x128xbf16>, vector<16x128xf32> -> vector<16x128xf32>
    %c0_9 = arith.constant 0 : index
    %c0_10 = arith.constant 0 : index
    %11 = vector.load %arg5[%c0_9, %c0_10] : memref<1x128xf32, #tpu.memory_space<vmem>>, vector<1x128xf32>
    %12 = vector.broadcast %11 : vector<1x128xf32> to vector<16x128xf32>
    %13 = arith.addf %10, %12 : vector<16x128xf32>
    %c0_11 = arith.constant 0 : index
    %c0_12 = arith.constant 0 : index
    %14 = vector.load %arg6[%c0_11, %c0_12] : memref<16x128xf32, #tpu.memory_space<vmem>>, vector<16x128xf32>
    tpu.vector_store %arg6[%c0_11, %c0_12], %13 {strides = array<i32>} : memref<16x128xf32, #tpu.memory_space<vmem>>, vector<16x128xf32>,
    return
  }
  func.func @transform_0(%arg0: i32) -> (i32, i32) {
    %c0_i32 = arith.constant 0 : i32
    %c0_i32_0 = arith.constant 0 : i32
    return %arg0, %c0_i32 : i32, i32
  }
  func.func @transform_1(%arg0: i32) -> (i32, i32) {
    %c0_i32 = arith.constant 0 : i32
    %c0_i32_0 = arith.constant 0 : i32
    %c0_i32_1 = arith.constant 0 : i32
    return %c0_i32, %c0_i32_0 : i32, i32
  }
  func.func @transform_2(%arg0: i32) -> (i32, i32) {
    %c0_i32 = arith.constant 0 : i32
    %c0_i32_0 = arith.constant 0 : i32
    %c0_i32_1 = arith.constant 0 : i32
    return %c0_i32, %c0_i32_0 : i32, i32
  }
  func.func @transform_3(%arg0: i32) -> (i32, i32) {
    %c0_i32 = arith.constant 0 : i32
    %c0_i32_0 = arith.constant 0 : i32
    %c0_i32_1 = arith.constant 0 : i32
    return %c0_i32, %c0_i32_0 : i32, i32
  }
  func.func @transform_4(%arg0: i32) -> (i32, i32) {
    %c0_i32 = arith.constant 0 : i32
    %c0_i32_0 = arith.constant 0 : i32
    %c0_i32_1 = arith.constant 0 : i32
    return %c0_i32, %c0_i32_0 : i32, i32
  }
  func.func @transform_5(%arg0: i32) -> (i32, i32) {
    %c0_i32 = arith.constant 0 : i32
    %c0_i32_0 = arith.constant 0 : i32
    return %arg0, %c0_i32 : i32, i32
  }
}

</mosaic_0001>

<bundles_post_ra>
// kernel: dqn_forward.4
= control target key start
LH: loop header
LB: loop body
LE: loop exit
PB: predicated region body
PF: predicated region fallthrough
CT: control target
= control target key end

     0   :  { %s1156_s1 = inlined_call_operand.vmem [shape: bf16[256,128], index: 1, kind: input, shape index: {}]   ;;  %s1157_s0 = inlined_call_operand.vmem [shape: bf16[208,256], index: 0, kind: input, shape index: {}]   ;;  %s1158_s2 = inlined_call_operand.vmem [shape: f32[1,128], index: 2, kind: input, shape index: {}]   ;;  %s1159_s3 = inlined_call_operand.vmem [shape: bf16[208,128], index: 3, kind: output, shape index: {}]  }
   0x1   :  { %v885_v0 = vld [vmem:[%s1156_s1 + $0x40] sm:$0xff]   ;;  %v887_v2 = vld [vmem:[%s1156_s1 + $0x48] sm:$0xff]   ;;  %v889_v4 = vld [vmem:[%s1156_s1 + $0x50] sm:$0xff]  }
   0x2   :  { %v886_v1 = vld [vmem:[%s1156_s1] sm:$0xff]   ;;  %775 = vmatprep.subr.bf16.mxu0 %v885_v0  ;;  %869 = vmatprep.subr.bf16.mxu1 %v885_v0  ;;  %v888_v3 = vld [vmem:[%s1156_s1 + $0x8] sm:$0xff]   ;;  %v890_v5 = vld [vmem:[%s1156_s1 + $0x10] sm:$0xff]  }
   0x3   :  { %776 = vmatpush3.bf16.msra.mxu0 %v886_v1  ;;  %877 = vmatpush3.bf16.msra.mxu1 %v886_v1  ;;  %v891_v6 = vld [vmem:[%s1156_s1 + $0x58] sm:$0xff]   ;;  %v893_v8 = vld [vmem:[%s1156_s1 + $0x60] sm:$0xff]   ;;  %v895_v10 = vld [vmem:[%s1156_s1 + $0x68] sm:$0xff]  }
   0x4   :  { %777 = vmatprep.subr.bf16.mxu0 %v887_v2  ;;  %870 = vmatprep.subr.bf16.mxu1 %v887_v2  ;;  %v892_v7 = vld [vmem:[%s1156_s1 + $0x18] sm:$0xff]   ;;  %v894_v9 = vld [vmem:[%s1156_s1 + $0x20] sm:$0xff]   ;;  %v896_v13 = vld [vmem:[%s1156_s1 + $0x28] sm:$0xff]  }
   0x5   :  { %v903_v11 = vld [vmem:[%s1157_s0 + $0x4] ss:$8 sps:$4 sm:$0xff]   ;;  %v906_v12 = vld [vmem:[%s1157_s0 + $0x74] ss:$8 sps:$4 sm:$0xff]   ;;  %v901_v18 = vld [vmem:[%s1157_s0] ss:$8 sps:$4 sm:$0xff]  }
   0x6   :  { %v897_v14 = vld [vmem:[%s1156_s1 + $0x70] sm:$0xff]   ;;  %338 = vmatprep.mubr.bf16.mxu0 %v903_v11  ;;  %394 = vmatprep.mubr.bf16.mxu1 %v906_v12  ;;  %v899_v16 = vld [vmem:[%s1156_s1 + $0x78] sm:$0xff]   ;;  %v910_v21 = vld [vmem:[%s1157_s0 + $0x84] ss:$8 sps:$4 sm:$0xff]  }
   0x7   :  { %778 = vmatpush3.bf16.msra.mxu0 %v888_v3  ;;  %878 = vmatpush3.bf16.msra.mxu1 %v888_v3  ;;  %v898_v15 = vld [vmem:[%s1156_s1 + $0x30] sm:$0xff]   ;;  %v900_v17 = vld [vmem:[%s1156_s1 + $0x38] sm:$0xff]   ;;  %v912_v23 = vld [vmem:[%s1157_s0 + $0x80] ss:$8 sps:$4 sm:$0xff]  }
   0x8   :  { %779 = vmatprep.subr.bf16.mxu0 %v889_v4  ;;  %871 = vmatprep.subr.bf16.mxu1 %v889_v4  ;;  %v904_v19 = vld [vmem:[%s1157_s0 + $0x70] ss:$8 sps:$4 sm:$0xff]   ;;  %v907_v20 = vld [vmem:[%s1157_s0 + $0x14] ss:$8 sps:$4 sm:$0xff]   ;;  %v913_v24 = vld [vmem:[%s1157_s0 + $0x24] ss:$8 sps:$4 sm:$0xff]  }
   0x9   :  { %v909_v22 = vld [vmem:[%s1157_s0 + $0x10] ss:$8 sps:$4 sm:$0xff]   ;;  %v916_v25 = vld [vmem:[%s1157_s0 + $0x94] ss:$8 sps:$4 sm:$0xff]   ;;  %v915_v26 = vld [vmem:[%s1157_s0 + $0x20] ss:$8 sps:$4 sm:$0xff]  }
   0xa   :  { %v918_v27 = vld [vmem:[%s1157_s0 + $0x90] ss:$8 sps:$4 sm:$0xff]   ;;  %v919_v28 = vld [vmem:[%s1157_s0 + $0x34] ss:$8 sps:$4 sm:$0xff]   ;;  %v922_v29 = vld [vmem:[%s1157_s0 + $0xa4] ss:$8 sps:$4 sm:$0xff]  }
   0xb   :  { %780 = vmatpush3.bf16.msra.mxu0 %v890_v5  ;;  %879 = vmatpush3.bf16.msra.mxu1 %v890_v5  ;;  %v921_v30 = vld [vmem:[%s1157_s0 + $0x30] ss:$8 sps:$4 sm:$0xff]   ;;  %v924_v31 = vld [vmem:[%s1157_s0 + $0xa0] ss:$8 sps:$4 sm:$0xff]   ;;  %v925_v32 = vld [vmem:[%s1157_s0 + $0x44] ss:$8 sps:$4 sm:$0xff]  }
   0xc   :  { %781 = vmatprep.subr.bf16.mxu0 %v891_v6  ;;  %872 = vmatprep.subr.bf16.mxu1 %v891_v6  ;;  %v928_v33 = vld [vmem:[%s1157_s0 + $0xb4] ss:$8 sps:$4 sm:$0xff]   ;;  %v927_v34 = vld [vmem:[%s1157_s0 + $0x40] ss:$8 sps:$4 sm:$0xff]   ;;  %v930_v35 = vld [vmem:[%s1157_s0 + $0xb0] ss:$8 sps:$4 sm:$0xff]  }
   0xd   :  { %v931_v36 = vld [vmem:[%s1157_s0 + $0x54] ss:$8 sps:$4 sm:$0xff]   ;;  %v934_v37 = vld [vmem:[%s1157_s0 + $0xc4] ss:$8 sps:$4 sm:$0xff]   ;;  %v933_v38 = vld [vmem:[%s1157_s0 + $0x50] ss:$8 sps:$4 sm:$0xff]  }
   0xe   :  { %v936_v39 = vld [vmem:[%s1157_s0 + $0xc0] ss:$8 sps:$4 sm:$0xff]   ;;  %v937_v40 = vld [vmem:[%s1157_s0 + $0x64] ss:$8 sps:$4 sm:$0xff]  }
   0xf   :  { %782 = vmatpush3.bf16.msra.mxu0 %v892_v7  ;;  %880 = vmatpush3.bf16.msra.mxu1 %v892_v7  ;;  %v939_v41 = vld [vmem:[%s1157_s0 + $0x60] ss:$8 sps:$4 sm:$0xff]  }
  0x10   :  { %783 = vmatprep.subr.bf16.mxu0 %v893_v8  ;;  %873 = vmatprep.subr.bf16.mxu1 %v893_v8  ;;  %v1089_v44 = vld [vmem:[%s1158_s2] ss:$0 sm:$0xff] }
  0x13   :  { %784 = vmatpush3.bf16.msra.mxu0 %v894_v9  ;;  %881 = vmatpush3.bf16.msra.mxu1 %v894_v9 }
  0x14   :  { %785 = vmatprep.subr.bf16.mxu0 %v895_v10  ;;  %874 = vmatprep.subr.bf16.mxu1 %v895_v10 }
  0x17   :  { %786 = vmatpush3.bf16.msra.mxu0 %v896_v13  ;;  %882 = vmatpush3.bf16.msra.mxu1 %v896_v13 }
  0x18   :  { %787 = vmatprep.subr.bf16.mxu0 %v897_v14  ;;  %875 = vmatprep.subr.bf16.mxu1 %v897_v14 }
  0x1b   :  { %788 = vmatpush3.bf16.msra.mxu0 %v898_v15  ;;  %883 = vmatpush3.bf16.msra.mxu1 %v898_v15 }
  0x1c   :  { %789 = vmatprep.subr.bf16.mxu0 %v899_v16  ;;  %876 = vmatprep.subr.bf16.mxu1 %v899_v16 }
  0x1f   :  { %790 = vmatpush3.bf16.msra.mxu0 %v900_v17  ;;  %884 = vmatpush3.bf16.msra.mxu1 %v900_v17 }
  0x22   :  { %339 = vmatmul.mubr.bf16.vlgmr.msra.gmra.mrb[0].mxu0 %v901_v18  ;;  %395 = vmatmul.mubr.bf16.vlgmr.msra.gmra.mrb[0].mxu1 %v904_v19 }
  0x23   :  { %346 = vmatprep.mubr.bf16.mxu0 %v907_v20  ;;  %402 = vmatprep.mubr.bf16.mxu1 %v910_v21 }
  0x2a   :  { %347 = vmatmul.mubr.bf16.gmra.mrb[4].mxu0 %v909_v22  ;;  %403 = vmatmul.mubr.bf16.gmra.mrb[4].mxu1 %v912_v23 }
  0x2b   :  { %354 = vmatprep.mubr.bf16.mxu0 %v913_v24  ;;  %410 = vmatprep.mubr.bf16.mxu1 %v916_v25 }
  0x32   :  { %355 = vmatmul.mubr.bf16.gmra.mrb[8].mxu0 %v915_v26  ;;  %411 = vmatmul.mubr.bf16.gmra.mrb[8].mxu1 %v918_v27 }
  0x33   :  { %362 = vmatprep.mubr.bf16.mxu0 %v919_v28  ;;  %418 = vmatprep.mubr.bf16.mxu1 %v922_v29 }
  0x3a   :  { %363 = vmatmul.mubr.bf16.gmra.mrb[12].mxu0 %v921_v30  ;;  %419 = vmatmul.mubr.bf16.gmra.mrb[12].mxu1 %v924_v31 }
  0x3b   :  { %370 = vmatprep.mubr.bf16.mxu0 %v925_v32  ;;  %426 = vmatprep.mubr.bf16.mxu1 %v928_v33 }
  0x42   :  { %371 = vmatmul.mubr.bf16.gmra.mrb[16].mxu0 %v927_v34  ;;  %427 = vmatmul.mubr.bf16.gmra.mrb[16].mxu1 %v930_v35 }
  0x43   :  { %378 = vmatprep.mubr.bf16.mxu0 %v931_v36  ;;  %434 = vmatprep.mubr.bf16.mxu1 %v934_v37 }
  0x4a   :  { %379 = vmatmul.mubr.bf16.gmra.mrb[20].mxu0 %v933_v38  ;;  %435 = vmatmul.mubr.bf16.gmra.mrb[20].mxu1 %v936_v39 }
  0x4b   :  { %386 = vmatprep.mubr.bf16.mxu0 %v937_v40 }
  0x52   :  { %387 = vmatmul.mubr.bf16.gmra.mrb[24].mxu0 %v939_v41 }
  0xf5   :  { %v791_v42 = vpop.f32.mrb[0].mxu0  ;;  %v833_v43 = vpop.f32.mrb[0].mxu1 }
  0xf6   :  { %v792_v45 = vpop.f32.mrb[1].mxu0  ;;  %v834_v46 = vpop.f32.mrb[1].mxu1 }
  0xf7   :  { %v793_v47 = vadd.f32 %v792_v45, %v791_v42  ;;  %v794_v48 = vpop.f32.mrb[2].mxu0  ;;  %v835_v49 = vadd.f32 %v834_v46, %v833_v43  ;;  %v836_v50 = vpop.f32.mrb[2].mxu1 }
  0xf8   :  { %v795_v51 = vpop.f32.mrb[3].mxu0  ;;  %v837_v52 = vpop.f32.mrb[3].mxu1 }
  0xf9   :  { %v341_v53 = vadd.f32 %v793_v47, %v1089_v44  ;;  %v796_v54 = vadd.f32 %v795_v51, %v794_v48  ;;  %v397_v55 = vadd.f32 %v835_v49, %v1089_v44  ;;  %v838_v56 = vadd.f32 %v837_v52, %v836_v50 }
  0xfb   :  { %v344_v57 = vadd.f32 %v796_v54, %v1089_v44  ;;  %v457_v58 = vmax.f32 %v397_v55, 0.0  ;;  %v400_v59 = vadd.f32 %v838_v56, %v1089_v44  ;;  %v443_v60 = vmax.f32 %v341_v53, 0.0 }
  0xfd   :  { %v444_v61 = vmax.f32 %v344_v57, 0.0  ;;  %v797_v62 = vpop.f32.mrb[4].mxu0  ;;  %v458_v63 = vmax.f32 %v400_v59, 0.0  ;;  %v839_v0 = vpop.f32.mrb[4].mxu1 }
  0xfe   :  { %v798_v1 = vpop.f32.mrb[5].mxu0  ;;  %v840_v2 = vpop.f32.mrb[5].mxu1 }
  0xff   :  { %v701_v3 = vpack.c.bf16 %v444_v61, %v443_v60  ;;  %v736_v4 = vpack.c.bf16 %v458_v63, %v457_v58  ;;  %v799_v5 = vadd.f32 %v798_v1, %v797_v62  ;;  %v800_v6 = vpop.f32.mrb[6].mxu0  ;;  %v841_v7 = vadd.f32 %v840_v2, %v839_v0  ;;  %v842_v8 = vpop.f32.mrb[6].mxu1 }
 0x100   :  { %v801_v9 = vpop.f32.mrb[7].mxu0  ;;  %v843_v10 = vpop.f32.mrb[7].mxu1 }
 0x101   :  { %702 = vst [vmem:[%s1159_s3] sm:$0xff] %v701_v3   ;;  %769 = vst [vmem:[%s1159_s3 + $0x38] sm:$0xff] %v736_v4   ;;  %v349_v11 = vadd.f32 %v799_v5, %v1089_v44  ;;  %v802_v12 = vadd.f32 %v801_v9, %v800_v6  ;;  %v405_v13 = vadd.f32 %v841_v7, %v1089_v44 }
 0x102   :  { %v844_v14 = vadd.f32 %v843_v10, %v842_v8 }
 0x103   :  { %v352_v15 = vadd.f32 %v802_v12, %v1089_v44  ;;  %v459_v16 = vmax.f32 %v405_v13, 0.0  ;;  %v445_v18 = vmax.f32 %v349_v11, 0.0 }
 0x104   :  { %v408_v17 = vadd.f32 %v844_v14, %v1089_v44 }
 0x105   :  { %v446_v19 = vmax.f32 %v352_v15, 0.0  ;;  %v803_v20 = vpop.f32.mrb[8].mxu0  ;;  %v845_v22 = vpop.f32.mrb[8].mxu1 }
 0x106   :  { %v460_v21 = vmax.f32 %v408_v17, 0.0  ;;  %v804_v23 = vpop.f32.mrb[9].mxu0  ;;  %v846_v24 = vpop.f32.mrb[9].mxu1 }
 0x107   :  { %v706_v25 = vpack.c.bf16 %v446_v19, %v445_v18  ;;  %v805_v27 = vadd.f32 %v804_v23, %v803_v20  ;;  %v806_v28 = vpop.f32.mrb[10].mxu0  ;;  %v847_v29 = vadd.f32 %v846_v24, %v845_v22  ;;  %v848_v30 = vpop.f32.mrb[10].mxu1 }
 0x108   :  { %v741_v26 = vpack.c.bf16 %v460_v21, %v459_v16  ;;  %v807_v31 = vpop.f32.mrb[11].mxu0  ;;  %v849_v32 = vpop.f32.mrb[11].mxu1 }
 0x109   :  { %763 = vst [vmem:[%s1159_s3 + $0x8] sm:$0xff] %v706_v25   ;;  %v357_v33 = vadd.f32 %v805_v27, %v1089_v44  ;;  %v808_v34 = vadd.f32 %v807_v31, %v806_v28  ;;  %v413_v35 = vadd.f32 %v847_v29, %v1089_v44  ;;  %v850_v36 = vadd.f32 %v849_v32, %v848_v30 }
 0x10a   :  { %770 = vst [vmem:[%s1159_s3 + $0x40] sm:$0xff] %v741_v26  }
 0x10b   :  { %v360_v37 = vadd.f32 %v808_v34, %v1089_v44  ;;  %v461_v38 = vmax.f32 %v413_v35, 0.0  ;;  %v416_v39 = vadd.f32 %v850_v36, %v1089_v44  ;;  %v447_v40 = vmax.f32 %v357_v33, 0.0 }
 0x10d   :  { %v448_v41 = vmax.f32 %v360_v37, 0.0  ;;  %v809_v42 = vpop.f32.mrb[12].mxu0  ;;  %v462_v43 = vmax.f32 %v416_v39, 0.0  ;;  %v851_v45 = vpop.f32.mrb[12].mxu1 }
 0x10e   :  { %v810_v46 = vpop.f32.mrb[13].mxu0  ;;  %v852_v47 = vpop.f32.mrb[13].mxu1 }
 0x10f   :  { %v711_v48 = vpack.c.bf16 %v448_v41, %v447_v40  ;;  %v746_v49 = vpack.c.bf16 %v462_v43, %v461_v38  ;;  %v811_v50 = vadd.f32 %v810_v46, %v809_v42  ;;  %v812_v51 = vpop.f32.mrb[14].mxu0  ;;  %v853_v52 = vadd.f32 %v852_v47, %v851_v45  ;;  %v854_v53 = vpop.f32.mrb[14].mxu1 }
 0x110   :  { %v813_v54 = vpop.f32.mrb[15].mxu0  ;;  %v855_v55 = vpop.f32.mrb[15].mxu1 }
 0x111   :  { %764 = vst [vmem:[%s1159_s3 + $0x10] sm:$0xff] %v711_v48   ;;  %771 = vst [vmem:[%s1159_s3 + $0x48] sm:$0xff] %v746_v49   ;;  %v365_v56 = vadd.f32 %v811_v50, %v1089_v44  ;;  %v814_v57 = vadd.f32 %v813_v54, %v812_v51  ;;  %v421_v58 = vadd.f32 %v853_v52, %v1089_v44 }
 0x112   :  { %v856_v59 = vadd.f32 %v855_v55, %v854_v53 }
 0x113   :  { %v368_v60 = vadd.f32 %v814_v57, %v1089_v44  ;;  %v463_v61 = vmax.f32 %v421_v58, 0.0  ;;  %v449_v63 = vmax.f32 %v365_v56, 0.0 }
 0x114   :  { %v424_v62 = vadd.f32 %v856_v59, %v1089_v44 }
 0x115   :  { %v450_v0 = vmax.f32 %v368_v60, 0.0  ;;  %v815_v1 = vpop.f32.mrb[16].mxu0  ;;  %v857_v3 = vpop.f32.mrb[16].mxu1 }
 0x116   :  { %v464_v2 = vmax.f32 %v424_v62, 0.0  ;;  %v816_v4 = vpop.f32.mrb[17].mxu0  ;;  %v858_v5 = vpop.f32.mrb[17].mxu1 }
 0x117   :  { %v716_v6 = vpack.c.bf16 %v450_v0, %v449_v63  ;;  %v817_v8 = vadd.f32 %v816_v4, %v815_v1  ;;  %v818_v9 = vpop.f32.mrb[18].mxu0  ;;  %v859_v10 = vadd.f32 %v858_v5, %v857_v3  ;;  %v860_v11 = vpop.f32.mrb[18].mxu1 }
 0x118   :  { %v751_v7 = vpack.c.bf16 %v464_v2, %v463_v61  ;;  %v819_v12 = vpop.f32.mrb[19].mxu0  ;;  %v861_v13 = vpop.f32.mrb[19].mxu1 }
 0x119   :  { %765 = vst [vmem:[%s1159_s3 + $0x18] sm:$0xff] %v716_v6   ;;  %v373_v14 = vadd.f32 %v817_v8, %v1089_v44  ;;  %v820_v15 = vadd.f32 %v819_v12, %v818_v9  ;;  %v429_v16 = vadd.f32 %v859_v10, %v1089_v44  ;;  %v862_v17 = vadd.f32 %v861_v13, %v860_v11 }
 0x11a   :  { %772 = vst [vmem:[%s1159_s3 + $0x50] sm:$0xff] %v751_v7  }
 0x11b   :  { %v376_v18 = vadd.f32 %v820_v15, %v1089_v44  ;;  %v465_v19 = vmax.f32 %v429_v16, 0.0  ;;  %v432_v20 = vadd.f32 %v862_v17, %v1089_v44  ;;  %v451_v21 = vmax.f32 %v373_v14, 0.0 }
 0x11d   :  { %v452_v22 = vmax.f32 %v376_v18, 0.0  ;;  %v821_v23 = vpop.f32.mrb[20].mxu0  ;;  %v466_v24 = vmax.f32 %v432_v20, 0.0  ;;  %v863_v25 = vpop.f32.mrb[20].mxu1 }
 0x11e   :  { %v822_v26 = vpop.f32.mrb[21].mxu0  ;;  %v864_v27 = vpop.f32.mrb[21].mxu1 }
 0x11f   :  { %v721_v28 = vpack.c.bf16 %v452_v22, %v451_v21  ;;  %v756_v29 = vpack.c.bf16 %v466_v24, %v465_v19  ;;  %v823_v30 = vadd.f32 %v822_v26, %v821_v23  ;;  %v824_v31 = vpop.f32.mrb[22].mxu0  ;;  %v865_v32 = vadd.f32 %v864_v27, %v863_v25  ;;  %v866_v33 = vpop.f32.mrb[22].mxu1 }
 0x120   :  { %v825_v34 = vpop.f32.mrb[23].mxu0  ;;  %v867_v35 = vpop.f32.mrb[23].mxu1 }
 0x121   :  { %766 = vst [vmem:[%s1159_s3 + $0x20] sm:$0xff] %v721_v28   ;;  %773 = vst [vmem:[%s1159_s3 + $0x58] sm:$0xff] %v756_v29   ;;  %v381_v36 = vadd.f32 %v823_v30, %v1089_v44  ;;  %v826_v37 = vadd.f32 %v825_v34, %v824_v31  ;;  %v437_v38 = vadd.f32 %v865_v32, %v1089_v44 }
 0x122   :  { %v868_v39 = vadd.f32 %v867_v35, %v866_v33 }
 0x123   :  { %v384_v40 = vadd.f32 %v826_v37, %v1089_v44  ;;  %v467_v41 = vmax.f32 %v437_v38, 0.0  ;;  %v453_v43 = vmax.f32 %v381_v36, 0.0 }
 0x124   :  { %v440_v42 = vadd.f32 %v868_v39, %v1089_v44 }
 0x125   :  { %v454_v45 = vmax.f32 %v384_v40, 0.0  ;;  %v827_v46 = vpop.f32.mrb[24].mxu0 }
 0x126   :  { %v468_v47 = vmax.f32 %v440_v42, 0.0  ;;  %v828_v48 = vpop.f32.mrb[25].mxu0 }
 0x127   :  { %v726_v49 = vpack.c.bf16 %v454_v45, %v453_v43  ;;  %v829_v51 = vadd.f32 %v828_v48, %v827_v46  ;;  %v830_v52 = vpop.f32.mrb[26].mxu0 }
 0x128   :  { %v761_v50 = vpack.c.bf16 %v468_v47, %v467_v41  ;;  %v831_v53 = vpop.f32.mrb[27].mxu0 }
 0x129   :  { %767 = vst [vmem:[%s1159_s3 + $0x28] sm:$0xff] %v726_v49   ;;  %v389_v54 = vadd.f32 %v829_v51, %v1089_v44  ;;  %v832_v55 = vadd.f32 %v831_v53, %v830_v52 }
 0x12a   :  { %774 = vst [vmem:[%s1159_s3 + $0x60] sm:$0xff] %v761_v50  }
 0x12b   :  { %v392_v56 = vadd.f32 %v832_v55, %v1089_v44  ;;  %v455_v57 = vmax.f32 %v389_v54, 0.0 }
 0x12d   :  { %v456_v58 = vmax.f32 %v392_v56, 0.0 }
 0x12f   :  { %v731_v59 = vpack.c.bf16 %v456_v58, %v455_v57 }
 0x131   :  { %768 = vst [vmem:[%s1159_s3 + $0x30] sm:$0xff] %v731_v59  }

// kernel: dqn_forward.5
= control target key start
LH: loop header
LB: loop body
LE: loop exit
PB: predicated region body
PF: predicated region fallthrough
CT: control target
= control target key end

     0   :  { %s761_s1 = inlined_call_operand.vmem [shape: bf16[512,128], index: 1, kind: input, shape index: {}]   ;;  %s762_s0 = inlined_call_operand.vmem [shape: bf16[32,512], index: 0, kind: input, shape index: {}]   ;;  %s763_s2 = inlined_call_operand.vmem [shape: f32[1,128], index: 2, kind: input, shape index: {}]   ;;  %s764_s3 = inlined_call_operand.vmem [shape: bf16[32,128], index: 3, kind: output, shape index: {}]  }
   0x1   :  { %v568_v0 = vld [vmem:[%s761_s1 + $0x40] sm:$0xff]   ;;  %v572_v4 = vld [vmem:[%s761_s1 + $0x48] sm:$0xff]   ;;  %v576_v8 = vld [vmem:[%s761_s1 + $0x50] sm:$0xff]  }
   0x2   :  { %v569_v1 = vld [vmem:[%s761_s1 + $0xc0] sm:$0xff]   ;;  %512 = vmatprep.subr.bf16.mxu0 %v568_v0  ;;  %v573_v5 = vld [vmem:[%s761_s1 + $0xc8] sm:$0xff]   ;;  %v577_v9 = vld [vmem:[%s761_s1 + $0xd0] sm:$0xff]  }
   0x3   :  { %v570_v2 = vld [vmem:[%s761_s1] sm:$0xff]   ;;  %540 = vmatprep.subr.bf16.mxu1 %v569_v1  ;;  %v574_v6 = vld [vmem:[%s761_s1 + $0x8] sm:$0xff]   ;;  %v578_v10 = vld [vmem:[%s761_s1 + $0x10] sm:$0xff]  }
   0x4   :  { %v571_v3 = vld [vmem:[%s761_s1 + $0x80] sm:$0xff]   ;;  %513 = vmatpush3.bf16.msra.mxu0 %v570_v2  ;;  %v575_v7 = vld [vmem:[%s761_s1 + $0x88] sm:$0xff]   ;;  %v579_v11 = vld [vmem:[%s761_s1 + $0x90] sm:$0xff]  }
   0x5   :  { %541 = vmatpush3.bf16.msra.mxu1 %v571_v3  ;;  %514 = vmatprep.subr.bf16.mxu0 %v572_v4  ;;  %v580_v12 = vld [vmem:[%s761_s1 + $0x58] sm:$0xff]   ;;  %v584_v16 = vld [vmem:[%s761_s1 + $0x60] sm:$0xff]   ;;  %v588_v20 = vld [vmem:[%s761_s1 + $0x68] sm:$0xff]  }
   0x6   :  { %542 = vmatprep.subr.bf16.mxu1 %v573_v5  ;;  %v581_v13 = vld [vmem:[%s761_s1 + $0xd8] sm:$0xff]   ;;  %v585_v17 = vld [vmem:[%s761_s1 + $0xe0] sm:$0xff]   ;;  %v589_v21 = vld [vmem:[%s761_s1 + $0xe8] sm:$0xff]  }
   0x7   :  { %v582_v14 = vld [vmem:[%s761_s1 + $0x18] sm:$0xff]   ;;  %v586_v18 = vld [vmem:[%s761_s1 + $0x20] sm:$0xff]   ;;  %v590_v22 = vld [vmem:[%s761_s1 + $0x28] sm:$0xff]  }
   0x8   :  { %515 = vmatpush3.bf16.msra.mxu0 %v574_v6  ;;  %v583_v15 = vld [vmem:[%s761_s1 + $0x98] sm:$0xff]   ;;  %v587_v19 = vld [vmem:[%s761_s1 + $0xa0] sm:$0xff]   ;;  %v591_v23 = vld [vmem:[%s761_s1 + $0xa8] sm:$0xff]  }
   0x9   :  { %543 = vmatpush3.bf16.msra.mxu1 %v575_v7  ;;  %516 = vmatprep.subr.bf16.mxu0 %v576_v8  ;;  %v592_v24 = vld [vmem:[%s761_s1 + $0x70] sm:$0xff]   ;;  %v596_v28 = vld [vmem:[%s761_s1 + $0x78] sm:$0xff]   ;;  %v452_v42 = vld [vmem:[%s763_s2] ss:$0 sm:$0xff] }
   0xa   :  { %544 = vmatprep.subr.bf16.mxu1 %v577_v9  ;;  %v593_v25 = vld [vmem:[%s761_s1 + $0xf0] sm:$0xff]   ;;  %v597_v29 = vld [vmem:[%s761_s1 + $0xf8] sm:$0xff]  }
   0xb   :  { %v594_v26 = vld [vmem:[%s761_s1 + $0x30] sm:$0xff]   ;;  %v598_v30 = vld [vmem:[%s761_s1 + $0x38] sm:$0xff]  }
   0xc   :  { %517 = vmatpush3.bf16.msra.mxu0 %v578_v10  ;;  %v595_v27 = vld [vmem:[%s761_s1 + $0xb0] sm:$0xff]   ;;  %v599_v31 = vld [vmem:[%s761_s1 + $0xb8] sm:$0xff]  }
   0xd   :  { %545 = vmatpush3.bf16.msra.mxu1 %v579_v11  ;;  %518 = vmatprep.subr.bf16.mxu0 %v580_v12  ;;  %v600_v32 = vld [vmem:[%s762_s0] ss:$16 sps:$4 sm:$0xff]   ;;  %v602_v33 = vld [vmem:[%s762_s0 + $0x4] ss:$16 sps:$4 sm:$0xff]   ;;  %v603_v34 = vld [vmem:[%s762_s0 + $0x8] ss:$16 sps:$4 sm:$0xff]  }
   0xe   :  { %546 = vmatprep.subr.bf16.mxu1 %v581_v13  ;;  %v605_v35 = vld [vmem:[%s762_s0 + $0xc] ss:$16 sps:$4 sm:$0xff]   ;;  %358 = vmatprep.mubr.bf16.mxu0 %v602_v33  ;;  %v606_v36 = vld [vmem:[%s762_s0 + $0x24] ss:$16 sps:$4 sm:$0xff]   ;;  %v610_v38 = vld [vmem:[%s762_s0 + $0x20] ss:$16 sps:$4 sm:$0xff]  }
   0xf   :  { %407 = vmatprep.mubr.bf16.mxu1 %v605_v35  ;;  %v608_v37 = vld [vmem:[%s762_s0 + $0x2c] ss:$16 sps:$4 sm:$0xff]   ;;  %v611_v39 = vld [vmem:[%s762_s0 + $0x28] ss:$16 sps:$4 sm:$0xff]  }
  0x10   :  { %519 = vmatpush3.bf16.msra.mxu0 %v582_v14 }
  0x11   :  { %547 = vmatpush3.bf16.msra.mxu1 %v583_v15  ;;  %520 = vmatprep.subr.bf16.mxu0 %v584_v16 }
  0x12   :  { %548 = vmatprep.subr.bf16.mxu1 %v585_v17 }
  0x14   :  { %521 = vmatpush3.bf16.msra.mxu0 %v586_v18 }
  0x15   :  { %549 = vmatpush3.bf16.msra.mxu1 %v587_v19  ;;  %522 = vmatprep.subr.bf16.mxu0 %v588_v20 }
  0x16   :  { %550 = vmatprep.subr.bf16.mxu1 %v589_v21 }
  0x18   :  { %523 = vmatpush3.bf16.msra.mxu0 %v590_v22 }
  0x19   :  { %551 = vmatpush3.bf16.msra.mxu1 %v591_v23  ;;  %524 = vmatprep.subr.bf16.mxu0 %v592_v24 }
  0x1a   :  { %552 = vmatprep.subr.bf16.mxu1 %v593_v25 }
  0x1c   :  { %525 = vmatpush3.bf16.msra.mxu0 %v594_v26 }
  0x1d   :  { %553 = vmatpush3.bf16.msra.mxu1 %v595_v27  ;;  %526 = vmatprep.subr.bf16.mxu0 %v596_v28 }
  0x1e   :  { %554 = vmatprep.subr.bf16.mxu1 %v597_v29 }
  0x20   :  { %527 = vmatpush3.bf16.msra.mxu0 %v598_v30 }
  0x21   :  { %555 = vmatpush3.bf16.msra.mxu1 %v599_v31 }
  0x23   :  { %359 = vmatmul.mubr.bf16.vlgmr.msra.gmra.mrb[0].mxu0 %v600_v32 }
  0x24   :  { %408 = vmatmul.mubr.bf16.vlgmr.msra.gmra.mrb[0].mxu1 %v603_v34  ;;  %366 = vmatprep.mubr.bf16.mxu0 %v606_v36 }
  0x25   :  { %415 = vmatprep.mubr.bf16.mxu1 %v608_v37 }
  0x2b   :  { %367 = vmatmul.mubr.bf16.gmra.mrb[4].mxu0 %v610_v38 }
  0x2c   :  { %416 = vmatmul.mubr.bf16.gmra.mrb[4].mxu1 %v611_v39 }
  0xf6   :  { %v528_v40 = vpop.f32.mrb[0].mxu0 }
  0xf7   :  { %v556_v41 = vpop.f32.mrb[0].mxu1  ;;  %v529_v43 = vpop.f32.mrb[1].mxu0 }
  0xf8   :  { %v530_v44 = vadd.f32 %v529_v43, %v528_v40  ;;  %v557_v45 = vpop.f32.mrb[1].mxu1  ;;  %v531_v46 = vpop.f32.mrb[2].mxu0 }
  0xf9   :  { %v558_v47 = vadd.f32 %v557_v45, %v556_v41  ;;  %v559_v48 = vpop.f32.mrb[2].mxu1  ;;  %v532_v49 = vpop.f32.mrb[3].mxu0 }
  0xfa   :  { %v361_v50 = vadd.f32 %v530_v44, %v452_v42  ;;  %v533_v51 = vadd.f32 %v532_v49, %v531_v46  ;;  %v560_v52 = vpop.f32.mrb[3].mxu1 }
  0xfb   :  { %v561_v53 = vadd.f32 %v560_v52, %v559_v48 }
  0xfc   :  { %v410_v54 = vadd.f32 %v558_v47, %v361_v50  ;;  %v364_v55 = vadd.f32 %v533_v51, %v452_v42 }
  0xfe   :  { %v413_v56 = vadd.f32 %v561_v53, %v364_v55  ;;  %v534_v57 = vpop.f32.mrb[4].mxu0  ;;  %v424_v60 = vmax.f32 %v410_v54, 0.0 }
  0xff   :  { %v562_v58 = vpop.f32.mrb[4].mxu1  ;;  %v535_v59 = vpop.f32.mrb[5].mxu0 }
 0x100   :  { %v425_v61 = vmax.f32 %v413_v56, 0.0  ;;  %v536_v62 = vadd.f32 %v535_v59, %v534_v57  ;;  %v563_v63 = vpop.f32.mrb[5].mxu1  ;;  %v537_v0 = vpop.f32.mrb[6].mxu0 }
 0x101   :  { %v564_v1 = vadd.f32 %v563_v63, %v562_v58  ;;  %v565_v2 = vpop.f32.mrb[6].mxu1  ;;  %v538_v3 = vpop.f32.mrb[7].mxu0 }
 0x102   :  { %v504_v4 = vpack.c.bf16 %v425_v61, %v424_v60  ;;  %v369_v5 = vadd.f32 %v536_v62, %v452_v42  ;;  %v539_v6 = vadd.f32 %v538_v3, %v537_v0  ;;  %v566_v7 = vpop.f32.mrb[7].mxu1 }
 0x103   :  { %v567_v8 = vadd.f32 %v566_v7, %v565_v2 }
 0x104   :  { %505 = vst [vmem:[%s764_s3] sm:$0xff] %v504_v4   ;;  %v418_v9 = vadd.f32 %v564_v1, %v369_v5  ;;  %v372_v10 = vadd.f32 %v539_v6, %v452_v42 }
 0x106   :  { %v421_v11 = vadd.f32 %v567_v8, %v372_v10  ;;  %v426_v12 = vmax.f32 %v418_v9, 0.0 }
 0x108   :  { %v427_v13 = vmax.f32 %v421_v11, 0.0 }
 0x10a   :  { %v509_v14 = vpack.c.bf16 %v427_v13, %v426_v12 }
 0x10c   :  { %511 = vst [vmem:[%s764_s3 + $0x8] sm:$0xff] %v509_v14  }

// kernel: dqn_forward.6
= control target key start
LH: loop header
LB: loop body
LE: loop exit
PB: predicated region body
PF: predicated region fallthrough
CT: control target
= control target key end

     0   :  { %v642_v33 = vmov 0.0   ;;  %vm643_vm0 = vmmov 0   ;;  %vm341_vm1 = vcmask 523264   ;;  %s793_s1 = inlined_call_operand.vmem [shape: bf16[576,128], index: 1, kind: input, shape index: {}]   ;;  %s794_s0 = inlined_call_operand.vmem [shape: bf16[16,576], index: 0, kind: input, shape index: {}]   ;;  %s795_s2 = inlined_call_operand.vmem [shape: f32[1,128], index: 2, kind: input, shape index: {}]   ;;  %s796_s3 = inlined_call_operand.vmem [shape: bf16[16,128], index: 3, kind: output, shape index: {}]  }
   0x1   :  { %v599_v0 = vld [vmem:[%s793_s1 + $0x40] sm:$0xff]   ;;  %v603_v4 = vld [vmem:[%s793_s1 + $0x48] sm:$0xff]   ;;  %v607_v8 = vld [vmem:[%s793_s1 + $0x50] sm:$0xff]  }
   0x2   :  { %v600_v1 = vld [vmem:[%s793_s1] sm:$0xff]   ;;  %536 = vmatprep.subr.bf16.mxu0 %v599_v0  ;;  %v604_v5 = vld [vmem:[%s793_s1 + $0x8] sm:$0xff]   ;;  %v608_v9 = vld [vmem:[%s793_s1 + $0x10] sm:$0xff]  }
   0x3   :  { %v601_v2 = vld [vmem:[%s793_s1 + $0xc0] sm:$0xff]   ;;  %537 = vmatpush3.bf16.msra.mxu0 %v600_v1  ;;  %v605_v6 = vld [vmem:[%s793_s1 + $0xc8] sm:$0xff]   ;;  %v609_v10 = vld [vmem:[%s793_s1 + $0xd0] sm:$0xff]  }
   0x4   :  { %v602_v3 = vld [vmem:[%s793_s1 + $0x80] sm:$0xff]   ;;  %558 = vmatprep.subr.bf16.mxu1 %v601_v2  ;;  %538 = vmatprep.subr.bf16.mxu0 %v603_v4  ;;  %v606_v7 = vld [vmem:[%s793_s1 + $0x88] sm:$0xff]   ;;  %v610_v11 = vld [vmem:[%s793_s1 + $0x90] sm:$0xff]  }
   0x5   :  { %559 = vmatpush3.bf16.msra.mxu1 %v602_v3  ;;  %v611_v12 = vld [vmem:[%s793_s1 + $0x58] sm:$0xff]   ;;  %v615_v16 = vld [vmem:[%s793_s1 + $0x60] sm:$0xff]   ;;  %v619_v20 = vld [vmem:[%s793_s1 + $0x68] sm:$0xff]  }
   0x6   :  { %560 = vmatprep.subr.bf16.mxu1 %v605_v6  ;;  %v612_v13 = vld [vmem:[%s793_s1 + $0x18] sm:$0xff]   ;;  %v616_v17 = vld [vmem:[%s793_s1 + $0x20] sm:$0xff]   ;;  %v620_v21 = vld [vmem:[%s793_s1 + $0x28] sm:$0xff]  }
   0x7   :  { %539 = vmatpush3.bf16.msra.mxu0 %v604_v5  ;;  %v613_v14 = vld [vmem:[%s793_s1 + $0xd8] sm:$0xff]   ;;  %v617_v18 = vld [vmem:[%s793_s1 + $0xe0] sm:$0xff]   ;;  %v621_v22 = vld [vmem:[%s793_s1 + $0xe8] sm:$0xff]  }
   0x8   :  { %540 = vmatprep.subr.bf16.mxu0 %v607_v8  ;;  %v614_v15 = vld [vmem:[%s793_s1 + $0x98] sm:$0xff]   ;;  %v618_v19 = vld [vmem:[%s793_s1 + $0xa0] sm:$0xff]   ;;  %v622_v23 = vld [vmem:[%s793_s1 + $0xa8] sm:$0xff]  }
   0x9   :  { %561 = vmatpush3.bf16.msra.mxu1 %v606_v7  ;;  %v623_v24 = vld [vmem:[%s793_s1 + $0x70] sm:$0xff]   ;;  %v627_v28 = vld [vmem:[%s793_s1 + $0x78] sm:$0xff]   ;;  %v636_v36 = vld [vmem:[%s794_s0 + $0xc] ss:$20 sps:$4 sm:$0xff]  }
   0xa   :  { %562 = vmatprep.subr.bf16.mxu1 %v609_v10  ;;  %v624_v25 = vld [vmem:[%s793_s1 + $0x30] sm:$0xff]   ;;  %v628_v29 = vld [vmem:[%s793_s1 + $0x38] sm:$0xff]   ;;  %v637_v37 = vld [vmem:[%s793_s1 + $0x100] sm:$0xff]   ;;  %418 = vmatprep.mubr.bf16.mxu1 %v636_v36 }
   0xb   :  { %541 = vmatpush3.bf16.msra.mxu0 %v608_v9  ;;  %v625_v26 = vld [vmem:[%s793_s1 + $0xf0] sm:$0xff]   ;;  %v629_v30 = vld [vmem:[%s793_s1 + $0xf8] sm:$0xff]   ;;  %v638_v38 = vld [vmem:[%s793_s1 + $0x108] sm:$0xff]  }
   0xc   :  { %542 = vmatprep.subr.bf16.mxu0 %v611_v12  ;;  %v626_v27 = vld [vmem:[%s793_s1 + $0xb0] sm:$0xff]   ;;  %v632_v32 = vld [vmem:[%s794_s0 + $0x4] ss:$20 sps:$4 sm:$0xff]   ;;  %v634_v35 = vld [vmem:[%s794_s0 + $0x8] ss:$20 sps:$4 sm:$0xff]  }
   0xd   :  { %563 = vmatpush3.bf16.msra.mxu1 %v610_v11  ;;  %v630_v31 = vld [vmem:[%s794_s0] ss:$20 sps:$4 sm:$0xff]   ;;  %v633_v34 = vld [vmem:[%s793_s1 + $0xb8] sm:$0xff]   ;;  %377 = vmatprep.mubr.bf16.mxu0 %v632_v32  ;;  %v641_v41 = vld [vmem:[%s794_s0 + $0x10] ss:$20 sps:$4 sm:$0xff]  }
   0xe   :  { %564 = vmatprep.subr.bf16.mxu1 %v613_v14  ;;  %v639_v39 = vld [vmem:[%s793_s1 + $0x110] sm:$0xff]   ;;  %v640_v40 = vld [vmem:[%s793_s1 + $0x118] sm:$0xff]   ;;  %v484_v43 = vld [vmem:[%s795_s2] ss:$0 sm:$0xff] }
   0xf   :  { %543 = vmatpush3.bf16.msra.mxu0 %v612_v13 }
  0x10   :  { %544 = vmatprep.subr.bf16.mxu0 %v615_v16 }
  0x11   :  { %565 = vmatpush3.bf16.msra.mxu1 %v614_v15 }
  0x12   :  { %566 = vmatprep.subr.bf16.mxu1 %v617_v18 }
  0x13   :  { %545 = vmatpush3.bf16.msra.mxu0 %v616_v17 }
  0x14   :  { %546 = vmatprep.subr.bf16.mxu0 %v619_v20 }
  0x15   :  { %567 = vmatpush3.bf16.msra.mxu1 %v618_v19 }
  0x16   :  { %568 = vmatprep.subr.bf16.mxu1 %v621_v22 }
  0x17   :  { %547 = vmatpush3.bf16.msra.mxu0 %v620_v21 }
  0x18   :  { %548 = vmatprep.subr.bf16.mxu0 %v623_v24 }
  0x19   :  { %569 = vmatpush3.bf16.msra.mxu1 %v622_v23 }
  0x1a   :  { %570 = vmatprep.subr.bf16.mxu1 %v625_v26 }
  0x1b   :  { %549 = vmatpush3.bf16.msra.mxu0 %v624_v25 }
  0x1c   :  { %550 = vmatprep.subr.bf16.mxu0 %v627_v28 }
  0x1d   :  { %571 = vmatpush3.bf16.msra.mxu1 %v626_v27 }
  0x1e   :  { %572 = vmatprep.subr.bf16.mxu1 %v629_v30 }
  0x1f   :  { %551 = vmatpush3.bf16.msra.mxu0 %v628_v29 }
  0x20   :  { %585 = vmatprep.subr.bf16.mxu0 %v642_v33 }
  0x21   :  { %573 = vmatpush3.bf16.msra.mxu1 %v633_v34 }
  0x22   :  { %378 = vmatmul.mubr.bf16.vlgmr.msra.gmra.mrb[0].mxu0 %v630_v31 }
  0x23   :  { %593 = vmatprep.mubr.msk.bf16.mxu0 %vm643_vm0, %v642_v33  ;;  %586 = vmatpush3.bf16.msra.mxu0 %v637_v37 }
  0x24   :  { %419 = vmatmul.mubr.bf16.vlgmr.msra.gmra.mrb[0].mxu1 %v634_v35  ;;  %587 = vmatprep.subr.bf16.mxu0 %v642_v33 }
  0x27   :  { %588 = vmatpush3.bf16.msra.mxu0 %v638_v38 }
  0x28   :  { %589 = vmatprep.subr.bf16.mxu0 %v642_v33 }
  0x2b   :  { %590 = vmatpush3.bf16.msra.mxu0 %v639_v39 }
  0x2c   :  { %591 = vmatprep.subr.bf16.mxu0 %v642_v33 }
  0x2f   :  { %592 = vmatpush3.bf16.msra.mxu0 %v640_v40 }
  0x32   :  { %594 = vmatmul.mubr.msk.bf16.vlgmr.msra.gmra.mrb[4].mxu0 %vm341_vm1, %v641_v41 }
  0xf5   :  { %v552_v42 = vpop.f32.mrb[0].mxu0 }
  0xf6   :  { %v553_v44 = vpop.f32.mrb[1].mxu0 }
  0xf7   :  { %v554_v45 = vadd.f32 %v553_v44, %v552_v42  ;;  %v555_v46 = vpop.f32.mrb[2].mxu0  ;;  %v574_v47 = vpop.f32.mrb[0].mxu1 }
  0xf8   :  { %v556_v48 = vpop.f32.mrb[3].mxu0  ;;  %v575_v51 = vpop.f32.mrb[1].mxu1 }
  0xf9   :  { %v380_v49 = vadd.f32 %v554_v45, %v484_v43  ;;  %v557_v50 = vadd.f32 %v556_v48, %v555_v46  ;;  %v576_v52 = vadd.f32 %v575_v51, %v574_v47  ;;  %v577_v53 = vpop.f32.mrb[2].mxu1 }
  0xfa   :  { %v578_v55 = vpop.f32.mrb[3].mxu1 }
  0xfb   :  { %v383_v54 = vadd.f32 %v557_v50, %v484_v43  ;;  %v579_v56 = vadd.f32 %v578_v55, %v577_v53  ;;  %v421_v57 = vadd.f32 %v576_v52, %v380_v49 }
  0xfd   :  { %v424_v58 = vadd.f32 %v579_v56, %v383_v54 }
 0x105   :  { %v461_v59 = vpop.f32.mrb[4].mxu0 }
 0x106   :  { %v462_v60 = vadd.f32 %v461_v59, %v421_v57  ;;  %v595_v61 = vpop.f32.mrb[5].mxu0 }
 0x107   :  { %v464_v62 = vpop.f32.mrb[6].mxu0 }
 0x108   :  { %v465_v63 = vadd.f32 %v464_v62, %v424_v58  ;;  %v596_v0 = vpop.f32.mrb[7].mxu0  ;;  %v468_v1 = vmax.f32 %v462_v60, 0.0 }
 0x10a   :  { %v469_v2 = vmax.f32 %v465_v63, 0.0 }
 0x10c   :  { %v534_v3 = vpack.c.bf16 %v469_v2, %v468_v1 }
 0x10e   :  { %535 = vst [vmem:[%s796_s3] sm:$0xff] %v534_v3  }

// kernel: dqn_forward.7
= control target key start
LH: loop header
LB: loop body
LE: loop exit
PB: predicated region body
PF: predicated region fallthrough
CT: control target
= control target key end

     0   :  { %s1498_s1 = inlined_call_operand.vmem [shape: bf16[256,512], index: 1, kind: input, shape index: {}]   ;;  %s1499_s0 = inlined_call_operand.vmem [shape: bf16[16,256], index: 0, kind: input, shape index: {}]   ;;  %s1500_s3 = inlined_call_operand.vmem [shape: bf16[512,128], index: 3, kind: input, shape index: {}]   ;;  %s1501_s2 = inlined_call_operand.vmem [shape: f32[1,512], index: 2, kind: input, shape index: {}]   ;;  %s1502_s4 = inlined_call_operand.vmem [shape: f32[1,128], index: 4, kind: input, shape index: {}]   ;;  %s1503_s5 = inlined_call_operand.vmem [shape: f32[16,128], index: 5, kind: output, shape index: {}]  }
   0x1   :  { %v1031_v0 = vld [vmem:[%s1498_s1 + $0x4] ss:$16 sps:$4 sm:$0xff]   ;;  %v1033_v1 = vld [vmem:[%s1498_s1 + $0xc] ss:$16 sps:$4 sm:$0xff]   ;;  %v1035_v2 = vld [vmem:[%s1498_s1] ss:$16 sps:$4 sm:$0xff]  }
   0x2   :  { %439 = vmatprep.subr.bf16.mxu0 %v1031_v0  ;;  %v1036_v3 = vld [vmem:[%s1498_s1 + $0x8] ss:$16 sps:$4 sm:$0xff]   ;;  %482 = vmatprep.subr.bf16.mxu1 %v1033_v1  ;;  %v1037_v4 = vld [vmem:[%s1498_s1 + $0x24] ss:$16 sps:$4 sm:$0xff]   ;;  %v1039_v5 = vld [vmem:[%s1498_s1 + $0x2c] ss:$16 sps:$4 sm:$0xff]  }
   0x3   :  { %440 = vmatpush1.bf16.msra.mxu0 %v1035_v2  ;;  %483 = vmatpush1.bf16.msra.mxu1 %v1036_v3  ;;  %v1041_v6 = vld [vmem:[%s1498_s1 + $0x20] ss:$16 sps:$4 sm:$0xff]   ;;  %v1042_v7 = vld [vmem:[%s1498_s1 + $0x28] ss:$16 sps:$4 sm:$0xff]   ;;  %v1043_v8 = vld [vmem:[%s1498_s1 + $0x44] ss:$16 sps:$4 sm:$0xff]  }
   0x4   :  { %441 = vmatprep.subr.bf16.mxu0 %v1037_v4  ;;  %484 = vmatprep.subr.bf16.mxu1 %v1039_v5  ;;  %v1045_v9 = vld [vmem:[%s1498_s1 + $0x4c] ss:$16 sps:$4 sm:$0xff]   ;;  %v1047_v10 = vld [vmem:[%s1498_s1 + $0x40] ss:$16 sps:$4 sm:$0xff]   ;;  %v1048_v11 = vld [vmem:[%s1498_s1 + $0x48] ss:$16 sps:$4 sm:$0xff]  }
   0x5   :  { %v1049_v12 = vld [vmem:[%s1498_s1 + $0x64] ss:$16 sps:$4 sm:$0xff]   ;;  %v1051_v13 = vld [vmem:[%s1498_s1 + $0x6c] ss:$16 sps:$4 sm:$0xff]   ;;  %v1053_v14 = vld [vmem:[%s1498_s1 + $0x60] ss:$16 sps:$4 sm:$0xff]  }
   0x6   :  { %v1054_v15 = vld [vmem:[%s1498_s1 + $0x68] ss:$16 sps:$4 sm:$0xff]   ;;  %v1055_v16 = vld [vmem:[%s1498_s1 + $0x84] ss:$16 sps:$4 sm:$0xff]   ;;  %v1057_v17 = vld [vmem:[%s1498_s1 + $0x8c] ss:$16 sps:$4 sm:$0xff]  }
   0x7   :  { %442 = vmatpush1.bf16.msra.mxu0 %v1041_v6  ;;  %485 = vmatpush1.bf16.msra.mxu1 %v1042_v7  ;;  %v1059_v18 = vld [vmem:[%s1498_s1 + $0x80] ss:$16 sps:$4 sm:$0xff]   ;;  %v1060_v19 = vld [vmem:[%s1498_s1 + $0x88] ss:$16 sps:$4 sm:$0xff]   ;;  %v1061_v20 = vld [vmem:[%s1498_s1 + $0xa4] ss:$16 sps:$4 sm:$0xff]  }
   0x8   :  { %443 = vmatprep.subr.bf16.mxu0 %v1043_v8  ;;  %486 = vmatprep.subr.bf16.mxu1 %v1045_v9  ;;  %v1063_v21 = vld [vmem:[%s1498_s1 + $0xac] ss:$16 sps:$4 sm:$0xff]   ;;  %v1065_v22 = vld [vmem:[%s1498_s1 + $0xa0] ss:$16 sps:$4 sm:$0xff]   ;;  %v1066_v23 = vld [vmem:[%s1498_s1 + $0xa8] ss:$16 sps:$4 sm:$0xff]  }
   0x9   :  { %v1067_v24 = vld [vmem:[%s1498_s1 + $0xc4] ss:$16 sps:$4 sm:$0xff]   ;;  %v1069_v25 = vld [vmem:[%s1498_s1 + $0xcc] ss:$16 sps:$4 sm:$0xff]   ;;  %v1071_v26 = vld [vmem:[%s1498_s1 + $0xc0] ss:$16 sps:$4 sm:$0xff]  }
   0xa   :  { %v1072_v27 = vld [vmem:[%s1498_s1 + $0xc8] ss:$16 sps:$4 sm:$0xff]   ;;  %v1073_v28 = vld [vmem:[%s1498_s1 + $0xe4] ss:$16 sps:$4 sm:$0xff]   ;;  %v1075_v29 = vld [vmem:[%s1498_s1 + $0xec] ss:$16 sps:$4 sm:$0xff]  }
   0xb   :  { %444 = vmatpush1.bf16.msra.mxu0 %v1047_v10  ;;  %487 = vmatpush1.bf16.msra.mxu1 %v1048_v11  ;;  %v1077_v30 = vld [vmem:[%s1498_s1 + $0xe0] ss:$16 sps:$4 sm:$0xff]   ;;  %v1078_v31 = vld [vmem:[%s1498_s1 + $0xe8] ss:$16 sps:$4 sm:$0xff]   ;;  %v1079_v32 = vld [vmem:[%s1498_s1 + $0x104] ss:$16 sps:$4 sm:$0xff]  }
   0xc   :  { %445 = vmatprep.subr.bf16.mxu0 %v1049_v12  ;;  %488 = vmatprep.subr.bf16.mxu1 %v1051_v13  ;;  %v1081_v33 = vld [vmem:[%s1498_s1 + $0x10c] ss:$16 sps:$4 sm:$0xff]   ;;  %v1083_v34 = vld [vmem:[%s1498_s1 + $0x100] ss:$16 sps:$4 sm:$0xff]   ;;  %v1084_v35 = vld [vmem:[%s1498_s1 + $0x108] ss:$16 sps:$4 sm:$0xff]  }
   0xd   :  { %v1085_v36 = vld [vmem:[%s1498_s1 + $0x124] ss:$16 sps:$4 sm:$0xff]   ;;  %v1087_v37 = vld [vmem:[%s1498_s1 + $0x12c] ss:$16 sps:$4 sm:$0xff]   ;;  %v1089_v38 = vld [vmem:[%s1498_s1 + $0x120] ss:$16 sps:$4 sm:$0xff]  }
   0xe   :  { %v1090_v39 = vld [vmem:[%s1498_s1 + $0x128] ss:$16 sps:$4 sm:$0xff]   ;;  %v1091_v40 = vld [vmem:[%s1498_s1 + $0x144] ss:$16 sps:$4 sm:$0xff]   ;;  %v1093_v41 = vld [vmem:[%s1498_s1 + $0x14c] ss:$16 sps:$4 sm:$0xff]  }
   0xf   :  { %446 = vmatpush1.bf16.msra.mxu0 %v1053_v14  ;;  %489 = vmatpush1.bf16.msra.mxu1 %v1054_v15  ;;  %v1095_v42 = vld [vmem:[%s1498_s1 + $0x140] ss:$16 sps:$4 sm:$0xff]   ;;  %v1096_v43 = vld [vmem:[%s1498_s1 + $0x148] ss:$16 sps:$4 sm:$0xff]   ;;  %v1097_v44 = vld [vmem:[%s1498_s1 + $0x164] ss:$16 sps:$4 sm:$0xff]  }
  0x10   :  { %447 = vmatprep.subr.bf16.mxu0 %v1055_v16  ;;  %490 = vmatprep.subr.bf16.mxu1 %v1057_v17  ;;  %v1099_v45 = vld [vmem:[%s1498_s1 + $0x16c] ss:$16 sps:$4 sm:$0xff]   ;;  %v1101_v46 = vld [vmem:[%s1498_s1 + $0x160] ss:$16 sps:$4 sm:$0xff]   ;;  %v1102_v47 = vld [vmem:[%s1498_s1 + $0x168] ss:$16 sps:$4 sm:$0xff]  }
  0x11   :  { %v1129_v48 = vld [vmem:[%s1499_s0 + $0x4] ss:$8 sps:$4 sm:$0xff]   ;;  %v1107_v51 = vld [vmem:[%s1498_s1 + $0x180] ss:$16 sps:$4 sm:$0xff]   ;;  %v1108_v52 = vld [vmem:[%s1498_s1 + $0x188] ss:$16 sps:$4 sm:$0xff]  }
  0x12   :  { %v1103_v49 = vld [vmem:[%s1498_s1 + $0x184] ss:$16 sps:$4 sm:$0xff]   ;;  %v1105_v50 = vld [vmem:[%s1498_s1 + $0x18c] ss:$16 sps:$4 sm:$0xff]   ;;  %471 = vmatprep.mubr.bf16.mxu0 %v1129_v48  ;;  %514 = vmatprep.mubr.bf16.mxu1 %v1129_v48  ;;  %v1113_v55 = vld [vmem:[%s1498_s1 + $0x1a0] ss:$16 sps:$4 sm:$0xff]  }
  0x13   :  { %448 = vmatpush1.bf16.msra.mxu0 %v1059_v18  ;;  %491 = vmatpush1.bf16.msra.mxu1 %v1060_v19  ;;  %v1109_v53 = vld [vmem:[%s1498_s1 + $0x1a4] ss:$16 sps:$4 sm:$0xff]   ;;  %v1111_v54 = vld [vmem:[%s1498_s1 + $0x1ac] ss:$16 sps:$4 sm:$0xff]   ;;  %v1114_v56 = vld [vmem:[%s1498_s1 + $0x1a8] ss:$16 sps:$4 sm:$0xff]  }
  0x14   :  { %449 = vmatprep.subr.bf16.mxu0 %v1061_v20  ;;  %492 = vmatprep.subr.bf16.mxu1 %v1063_v21  ;;  %v1115_v57 = vld [vmem:[%s1498_s1 + $0x1c4] ss:$16 sps:$4 sm:$0xff]   ;;  %v1117_v58 = vld [vmem:[%s1498_s1 + $0x1cc] ss:$16 sps:$4 sm:$0xff]   ;;  %v1119_v59 = vld [vmem:[%s1498_s1 + $0x1c0] ss:$16 sps:$4 sm:$0xff]  }
  0x15   :  { %v1120_v60 = vld [vmem:[%s1498_s1 + $0x1c8] ss:$16 sps:$4 sm:$0xff]   ;;  %v1121_v61 = vld [vmem:[%s1498_s1 + $0x1e4] ss:$16 sps:$4 sm:$0xff]   ;;  %v1123_v62 = vld [vmem:[%s1498_s1 + $0x1ec] ss:$16 sps:$4 sm:$0xff]  }
  0x16   :  { %v1125_v63 = vld [vmem:[%s1498_s1 + $0x1e0] ss:$16 sps:$4 sm:$0xff]   ;;  %v1126_v0 = vld [vmem:[%s1498_s1 + $0x1e8] ss:$16 sps:$4 sm:$0xff]  }
  0x17   :  { %450 = vmatpush1.bf16.msra.mxu0 %v1065_v22  ;;  %493 = vmatpush1.bf16.msra.mxu1 %v1066_v23  ;;  %v1130_v1 = vld [vmem:[%s1500_s3 + $0x40] sm:$0xff]   ;;  %v1134_v6 = vld [vmem:[%s1500_s3 + $0x48] sm:$0xff]   ;;  %v1138_v10 = vld [vmem:[%s1500_s3 + $0x50] sm:$0xff]  }
  0x18   :  { %451 = vmatprep.subr.bf16.mxu0 %v1067_v24  ;;  %494 = vmatprep.subr.bf16.mxu1 %v1069_v25  ;;  %v1127_v2 = vld [vmem:[%s1499_s0] ss:$8 sps:$4 sm:$0xff]   ;;  %v1139_v11 = vld [vmem:[%s1500_s3 + $0xd0] sm:$0xff]   ;;  %v1142_v14 = vld [vmem:[%s1500_s3 + $0x58] sm:$0xff]  }
  0x19   :  { %v1131_v3 = vld [vmem:[%s1500_s3 + $0xc0] sm:$0xff]   ;;  %v1135_v7 = vld [vmem:[%s1500_s3 + $0xc8] sm:$0xff]   ;;  %v1140_v12 = vld [vmem:[%s1500_s3 + $0x10] sm:$0xff]  }
  0x1a   :  { %v1132_v4 = vld [vmem:[%s1500_s3] sm:$0xff]   ;;  %v1136_v8 = vld [vmem:[%s1500_s3 + $0x8] sm:$0xff]   ;;  %v1141_v13 = vld [vmem:[%s1500_s3 + $0x90] sm:$0xff]  }
  0x1b   :  { %452 = vmatpush1.bf16.msra.mxu0 %v1071_v26  ;;  %495 = vmatpush1.bf16.msra.mxu1 %v1072_v27  ;;  %v1133_v5 = vld [vmem:[%s1500_s3 + $0x80] sm:$0xff]   ;;  %v1137_v9 = vld [vmem:[%s1500_s3 + $0x88] sm:$0xff]   ;;  %v1143_v15 = vld [vmem:[%s1500_s3 + $0xd8] sm:$0xff]  }
  0x1c   :  { %453 = vmatprep.subr.bf16.mxu0 %v1073_v28  ;;  %496 = vmatprep.subr.bf16.mxu1 %v1075_v29  ;;  %v1144_v16 = vld [vmem:[%s1500_s3 + $0x18] sm:$0xff]   ;;  %v1146_v18 = vld [vmem:[%s1500_s3 + $0x60] sm:$0xff]   ;;  %v1150_v22 = vld [vmem:[%s1500_s3 + $0x68] sm:$0xff]  }
  0x1d   :  { %v1145_v17 = vld [vmem:[%s1500_s3 + $0x98] sm:$0xff]   ;;  %v1147_v19 = vld [vmem:[%s1500_s3 + $0xe0] sm:$0xff]   ;;  %v1151_v23 = vld [vmem:[%s1500_s3 + $0xe8] sm:$0xff]  }
  0x1e   :  { %v1148_v20 = vld [vmem:[%s1500_s3 + $0x20] sm:$0xff]   ;;  %v1152_v24 = vld [vmem:[%s1500_s3 + $0x28] sm:$0xff]   ;;  %v1154_v26 = vld [vmem:[%s1500_s3 + $0x70] sm:$0xff]  }
  0x1f   :  { %454 = vmatpush1.bf16.msra.mxu0 %v1077_v30  ;;  %497 = vmatpush1.bf16.msra.mxu1 %v1078_v31  ;;  %v1149_v21 = vld [vmem:[%s1500_s3 + $0xa0] sm:$0xff]   ;;  %v1153_v25 = vld [vmem:[%s1500_s3 + $0xa8] sm:$0xff]   ;;  %v1155_v27 = vld [vmem:[%s1500_s3 + $0xf0] sm:$0xff]  }
  0x20   :  { %455 = vmatprep.subr.bf16.mxu0 %v1079_v32  ;;  %498 = vmatprep.subr.bf16.mxu1 %v1081_v33  ;;  %v1156_v28 = vld [vmem:[%s1500_s3 + $0x30] sm:$0xff]   ;;  %v1158_v30 = vld [vmem:[%s1500_s3 + $0x78] sm:$0xff]  }
  0x21   :  { %v1157_v29 = vld [vmem:[%s1500_s3 + $0xb0] sm:$0xff]   ;;  %v1159_v31 = vld [vmem:[%s1500_s3 + $0xf8] sm:$0xff]  }
  0x22   :  { %v1160_v32 = vld [vmem:[%s1500_s3 + $0x38] sm:$0xff]  }
  0x23   :  { %456 = vmatpush1.bf16.msra.mxu0 %v1083_v34  ;;  %499 = vmatpush1.bf16.msra.mxu1 %v1084_v35  ;;  %v1161_v33 = vld [vmem:[%s1500_s3 + $0xb8] sm:$0xff]   ;;  %v89_v34 = vlaneseq }
  0x24   :  { %457 = vmatprep.subr.bf16.mxu0 %v1085_v36  ;;  %500 = vmatprep.subr.bf16.mxu1 %v1087_v37 }
  0x25   :  { %v90_v35 = vshrl.u32 %v89_v34, 7 }
  0x27   :  { %458 = vmatpush1.bf16.msra.mxu0 %v1089_v38  ;;  %501 = vmatpush1.bf16.msra.mxu1 %v1090_v39  ;;  %v91_v36 = vsub.s32 0, %v90_v35  ;;  %v99_v37 = vsub.s32 2, %v90_v35  ;;  %v87_v38 = vld [vmem:[%s1501_s2] sm:$0xf]  ;;  %v95_v39 = vsub.s32 1, %v90_v35 }
  0x28   :  { %459 = vmatprep.subr.bf16.mxu0 %v1091_v40  ;;  %502 = vmatprep.subr.bf16.mxu1 %v1093_v41  ;;  %v103_v40 = vsub.s32 3, %v90_v35 }
  0x29   :  { %v92_v41 = vrot.slane %v87_v38, %v91_v36 }
  0x2b   :  { %460 = vmatpush1.bf16.msra.mxu0 %v1095_v42  ;;  %503 = vmatpush1.bf16.msra.mxu1 %v1096_v43  ;;  %v100_v42 = vrot.slane %v87_v38, %v99_v37  ;;  %v96_v43 = vrot.slane %v87_v38, %v95_v39 }
  0x2c   :  { %461 = vmatprep.subr.bf16.mxu0 %v1097_v44  ;;  %504 = vmatprep.subr.bf16.mxu1 %v1099_v45  ;;  %v104_v44 = vrot.slane %v87_v38, %v103_v40 }
  0x2f   :  { %462 = vmatpush1.bf16.msra.mxu0 %v1101_v46  ;;  %505 = vmatpush1.bf16.msra.mxu1 %v1102_v47 }
  0x30   :  { %463 = vmatprep.subr.bf16.mxu0 %v1103_v49  ;;  %506 = vmatprep.subr.bf16.mxu1 %v1105_v50 }
  0x33   :  { %464 = vmatpush1.bf16.msra.mxu0 %v1107_v51  ;;  %507 = vmatpush1.bf16.msra.mxu1 %v1108_v52 }
  0x34   :  { %465 = vmatprep.subr.bf16.mxu0 %v1109_v53  ;;  %508 = vmatprep.subr.bf16.mxu1 %v1111_v54 }
  0x37   :  { %466 = vmatpush1.bf16.msra.mxu0 %v1113_v55  ;;  %509 = vmatpush1.bf16.msra.mxu1 %v1114_v56 }
  0x38   :  { %467 = vmatprep.subr.bf16.mxu0 %v1115_v57  ;;  %510 = vmatprep.subr.bf16.mxu1 %v1117_v58 }
  0x3b   :  { %468 = vmatpush1.bf16.msra.mxu0 %v1119_v59  ;;  %511 = vmatpush1.bf16.msra.mxu1 %v1120_v60 }
  0x3c   :  { %469 = vmatprep.subr.bf16.mxu0 %v1121_v61  ;;  %512 = vmatprep.subr.bf16.mxu1 %v1123_v62 }
  0x3f   :  { %470 = vmatpush1.bf16.msra.mxu0 %v1125_v63  ;;  %513 = vmatpush1.bf16.msra.mxu1 %v1126_v0 }
  0x40   :  { %987 = vmatprep.subr.bf16.mxu0 %v1130_v1  ;;  %1009 = vmatprep.subr.bf16.mxu1 %v1131_v3 }
  0x42   :  { %472 = vmatmul.mubr.bf16.vlgmr.msra.gmra.mrb[0].mxu0 %v1127_v2  ;;  %515 = vmatmul.mubr.bf16.vlgmr.msra.gmra.mrb[0].mxu1 %v1127_v2 }
  0x43   :  { %988 = vmatpush3.bf16.msra.mxu0 %v1132_v4  ;;  %1010 = vmatpush3.bf16.msra.mxu1 %v1133_v5 }
  0x44   :  { %989 = vmatprep.subr.bf16.mxu0 %v1134_v6  ;;  %1011 = vmatprep.subr.bf16.mxu1 %v1135_v7 }
  0x47   :  { %990 = vmatpush3.bf16.msra.mxu0 %v1136_v8  ;;  %1012 = vmatpush3.bf16.msra.mxu1 %v1137_v9 }
  0x48   :  { %991 = vmatprep.subr.bf16.mxu0 %v1138_v10  ;;  %1013 = vmatprep.subr.bf16.mxu1 %v1139_v11  ;;  %v954_v11 = vld [vmem:[%s1502_s4] ss:$0 sm:$0xff] }
  0x4b   :  { %992 = vmatpush3.bf16.msra.mxu0 %v1140_v12  ;;  %1014 = vmatpush3.bf16.msra.mxu1 %v1141_v13 }
  0x4c   :  { %993 = vmatprep.subr.bf16.mxu0 %v1142_v14  ;;  %1015 = vmatprep.subr.bf16.mxu1 %v1143_v15 }
  0x4f   :  { %994 = vmatpush3.bf16.msra.mxu0 %v1144_v16  ;;  %1016 = vmatpush3.bf16.msra.mxu1 %v1145_v17 }
  0x50   :  { %995 = vmatprep.subr.bf16.mxu0 %v1146_v18  ;;  %1017 = vmatprep.subr.bf16.mxu1 %v1147_v19 }
  0x53   :  { %996 = vmatpush3.bf16.msra.mxu0 %v1148_v20  ;;  %1018 = vmatpush3.bf16.msra.mxu1 %v1149_v21 }
  0x54   :  { %997 = vmatprep.subr.bf16.mxu0 %v1150_v22  ;;  %1019 = vmatprep.subr.bf16.mxu1 %v1151_v23 }
  0x57   :  { %998 = vmatpush3.bf16.msra.mxu0 %v1152_v24  ;;  %1020 = vmatpush3.bf16.msra.mxu1 %v1153_v25 }
  0x58   :  { %999 = vmatprep.subr.bf16.mxu0 %v1154_v26  ;;  %1021 = vmatprep.subr.bf16.mxu1 %v1155_v27 }
  0x5b   :  { %1000 = vmatpush3.bf16.msra.mxu0 %v1156_v28  ;;  %1022 = vmatpush3.bf16.msra.mxu1 %v1157_v29 }
  0x5c   :  { %1001 = vmatprep.subr.bf16.mxu0 %v1158_v30  ;;  %1023 = vmatprep.subr.bf16.mxu1 %v1159_v31 }
  0x5f   :  { %1002 = vmatpush3.bf16.msra.mxu0 %v1160_v32  ;;  %1024 = vmatpush3.bf16.msra.mxu1 %v1161_v33 }
 0x115   :  { %v473_v45 = vpop.f32.mrb[0].mxu0  ;;  %v516_v46 = vpop.f32.mrb[0].mxu1 }
 0x116   :  { %v474_v47 = vadd.f32 %v473_v45, %v92_v41  ;;  %v517_v48 = vadd.f32 %v516_v46, %v100_v42  ;;  %v475_v49 = vpop.f32.mrb[1].mxu0  ;;  %v518_v50 = vpop.f32.mrb[1].mxu1 }
 0x117   :  { %v476_v51 = vadd.f32 %v475_v49, %v96_v43  ;;  %v519_v52 = vadd.f32 %v518_v50, %v104_v44  ;;  %v477_v53 = vpop.f32.mrb[2].mxu0  ;;  %v520_v54 = vpop.f32.mrb[2].mxu1 }
 0x118   :  { %v527_v55 = vmax.f32 %v517_v48, 0.0  ;;  %v478_v56 = vadd.f32 %v477_v53, %v92_v41  ;;  %v521_v57 = vadd.f32 %v520_v54, %v100_v42  ;;  %v479_v58 = vpop.f32.mrb[3].mxu0  ;;  %v522_v59 = vpop.f32.mrb[3].mxu1  ;;  %v525_v63 = vmax.f32 %v474_v47, 0.0 }
 0x119   :  { %v528_v60 = vmax.f32 %v519_v52, 0.0  ;;  %v480_v61 = vadd.f32 %v479_v58, %v96_v43  ;;  %v523_v62 = vadd.f32 %v522_v59, %v104_v44  ;;  %v526_v2 = vmax.f32 %v476_v51, 0.0 }
 0x11a   :  { %v529_v0 = vmax.f32 %v478_v56, 0.0  ;;  %v531_v1 = vmax.f32 %v521_v57, 0.0 }
 0x11b   :  { %v530_v3 = vmax.f32 %v480_v61, 0.0  ;;  %v532_v4 = vmax.f32 %v523_v62, 0.0 }
 0x11c   :  { %v533_v5 = vpack.c.bf16 %v529_v0, %v525_v63  ;;  %v535_v6 = vpack.c.bf16 %v531_v1, %v527_v55 }
 0x11d   :  { %v534_v7 = vpack.c.bf16 %v530_v3, %v526_v2  ;;  %v536_v8 = vpack.c.bf16 %v532_v4, %v528_v60 }
 0x11f   :  { %832 = vmatprep.mubr.bf16.mxu0 %v534_v7  ;;  %873 = vmatprep.mubr.bf16.mxu1 %v536_v8 }
 0x120   :  { %833 = vmatmul.mubr.bf16.vlgmr.msra.gmra.mrb[4].mxu0 %v533_v5  ;;  %874 = vmatmul.mubr.bf16.vlgmr.msra.gmra.mrb[4].mxu1 %v535_v6 }
 0x1f3   :  { %v1003_v9 = vpop.f32.mrb[4].mxu0  ;;  %v1025_v10 = vpop.f32.mrb[4].mxu1 }
 0x1f4   :  { %v1004_v12 = vpop.f32.mrb[5].mxu0  ;;  %v1026_v13 = vpop.f32.mrb[5].mxu1 }
 0x1f5   :  { %v1005_v14 = vadd.f32 %v1004_v12, %v1003_v9  ;;  %v1027_v15 = vadd.f32 %v1026_v13, %v1025_v10  ;;  %v1006_v16 = vpop.f32.mrb[6].mxu0  ;;  %v1028_v17 = vpop.f32.mrb[6].mxu1 }
 0x1f6   :  { %v1007_v18 = vpop.f32.mrb[7].mxu0  ;;  %v1029_v19 = vpop.f32.mrb[7].mxu1 }
 0x1f7   :  { %v835_v20 = vadd.f32 %v1005_v14, %v954_v11  ;;  %v1008_v21 = vadd.f32 %v1007_v18, %v1006_v16  ;;  %v1030_v22 = vadd.f32 %v1029_v19, %v1028_v17 }
 0x1f9   :  { %v876_v23 = vadd.f32 %v1027_v15, %v835_v20  ;;  %v838_v24 = vadd.f32 %v1008_v21, %v954_v11 }
 0x1fb   :  { %882 = vst [vmem:[%s1503_s5] sm:$0xff] %v876_v23  ;;  %v879_v25 = vadd.f32 %v1030_v22, %v838_v24 }
 0x1fd   :  { %883 = vst [vmem:[%s1503_s5 + $0x8] sm:$0xff] %v879_v25 }

</bundles_post_ra>
